<compile_context>
chip_gen: v7x
topology: tpu7x:2x2x1
jax: 0.10.0
libtpu: 0.0.40
codegen_flags: <defaults>
</compile_context>

<pallas_src>
import jax
import jax.numpy as jnp
from jax import lax
from jax.experimental import pallas as pl
from jax.experimental.pallas import tpu as pltpu


def _round_up(n, m):
    return ((n + m - 1) // m) * m


def make_imitation_kernel(T, Bp, H, W, rows):
    """Build the single-invocation kernel closure.

    rows: dict name -> (row_start, row_end) static offsets into the packed
    parameter slab.
    """

    def kernel(x_ref, w_ref, out_ref):
        # ---- static, tile-aligned slices of the single parameter slab ----
        wih1 = w_ref[rows["wih1"][0]:rows["wih1"][1], :]   # (Ip, W)
        whh1 = w_ref[rows["whh1"][0]:rows["whh1"][1], :]   # (H,  W)
        wih2 = w_ref[rows["wih2"][0]:rows["wih2"][1], :]   # (H,  W)
        whh2 = w_ref[rows["whh2"][0]:rows["whh2"][1], :]   # (H,  W)
        bias = w_ref[rows["bias"][0]:rows["bias"][1], :]   # (8,  W)
        wfc1 = w_ref[rows["wfc1"][0]:rows["wfc1"][1], :]   # (H,  W)
        wfc2 = w_ref[rows["wfc2"][0]:rows["wfc2"][1], :]   # (H,  W)

        b1 = bias[0:1, :]                                  # (1, W)
        b2 = jnp.broadcast_to(bias[1:2, :], (Bp, W))       # hoisted broadcast
        bfc1 = bias[2:3, :]
        bfc2 = bias[3:4, :]

        # Hoisted layer-1 input projection: ONE (T*Bp, Ip) @ (Ip, W) matmul
        # with the combined bias folded in; fully off the recurrent path.
        gx1 = jnp.dot(x_ref[...], wih1,
                      preferred_element_type=jnp.float32) + b1

        def gate_update(gates, c):
            # One full-vreg sigmoid + one full-vreg tanh (EUP), then slices.
            sg = jax.nn.sigmoid(gates)
            tg = jnp.tanh(gates)
            i = sg[:, 0 * H:1 * H]          # PyTorch gate order: i, f, g, o
            f = sg[:, 1 * H:2 * H]
            g = tg[:, 2 * H:3 * H]
            o = sg[:, 3 * H:4 * H]
            c_new = f * c + i * g
            return o * jnp.tanh(c_new), c_new

        zeros = jnp.zeros((Bp, H), jnp.float32)
        h1, c1, h2, c2 = zeros, zeros, zeros, zeros

        # T is small & static: fully unrolled straight-line recurrence.
        for t in range(T):
            # Layer-2 recurrent term depends only on h2_{t-1}: it overlaps
            # layer-1's recurrent matmul of the same step.
            rec2 = jnp.dot(h2, whh2, preferred_element_type=jnp.float32)

            # Layer 1: only the recurrent matmul remains in the serial chain.
            gates1 = gx1[t * Bp:(t + 1) * Bp, :] + jnp.dot(
                h1, whh1, preferred_element_type=jnp.float32)
            h1, c1 = gate_update(gates1, c1)

            # Layer 2: split matmuls, no per-step concat on the critical path.
            # TODO(synk): nn.LSTM dropout=0.2 between layers is train-only;
            # this kernel reproduces inference semantics (no dropout).
            gates2 = jnp.dot(h1, wih2,
                             preferred_element_type=jnp.float32) + rec2 + b2
            h2, c2 = gate_update(gates2, c2)

        # FC head on the last timestep's layer-2 hidden state.
        fc1 = jnp.dot(h2, wfc1, preferred_element_type=jnp.float32) + bfc1
        fc1 = jnp.maximum(fc1, 0.0)
        out_ref[...] = (jnp.dot(fc1[:, 0:H], wfc2,
                                preferred_element_type=jnp.float32) + bfc2)

    return kernel


def pack_params(p, input_size, hidden_size, output_size, prediction_horizon):
    """Pack every weight/bias into ONE lane-padded f32 slab (single DMA)."""
    H = hidden_size
    OP = output_size * prediction_horizon
    W = max(128, _round_up(4 * H, 128))       # lane width of the slab
    Ip = _round_up(input_size, 8)             # sublane-padded input width

    def pad_to(a, nrows, ncols):
        r, c = a.shape
        return jnp.pad(a, ((0, nrows - r), (0, ncols - c)))

    segs, rows = [], {}
    off = 0

    def add(name, a, nrows):
        nonlocal off
        segs.append(pad_to(a, nrows, W))
        rows[name] = (off, off + nrows)
        off += nrows

    add("wih1", p["wih1_T"], Ip)              # (Ip, W), zero rows beyond I
    add("whh1", p["whh1_T"], H)
    add("wih2", p["wih2_T"], H)
    add("whh2", p["whh2_T"], H)

    bias_blk = jnp.zeros((8, W), jnp.float32)
    bias_blk = bias_blk.at[0, :4 * H].set(p["b1"][0])
    bias_blk = bias_blk.at[1, :4 * H].set(p["b2"][0])
    bias_blk = bias_blk.at[2, :H].set(p["bfc1"][0])
    bias_blk = bias_blk.at[3, :OP].set(p["bfc2"][0])
    add("bias", bias_blk, 8)

    add("wfc1", p["wfc1_T"], H)               # zero cols beyond H
    add("wfc2", p["wfc2_T"], H)               # zero cols beyond OP

    slab = jnp.concatenate(segs, axis=0)      # (176, 128) f32 for H=32, I=4
    return slab, rows, W, Ip


def imitation_forward(x, slab, rows, W, Ip, hidden_size,
                      prediction_horizon, output_size):
    """x: (B, T, I) float32 (PyTorch batch-first). Returns (B, P, O)."""
    B, T, I = x.shape
    H = hidden_size
    OP = output_size * prediction_horizon
    Bp = max(8, _round_up(B, 8))   # fill vreg sublanes; extra rows discarded

    # Time-major, batch padded to Bp so each timestep of the hoisted
    # projection is its own sublane-tile-aligned (8, W) block.
    x_tm = jnp.transpose(x, (1, 0, 2))                        # (T, B, I)
    x_tm = jnp.pad(x_tm, ((0, 0), (0, Bp - B), (0, Ip - I)))  # (T, Bp, Ip)
    x_flat = x_tm.reshape(T * Bp, Ip)

    kernel = make_imitation_kernel(T, Bp, H, W, rows)
    vmem = pl.BlockSpec(memory_space=pltpu.MemorySpace.VMEM)
    out = pl.pallas_call(
        kernel,
        out_shape=jax.ShapeDtypeStruct((Bp, W), jnp.float32),
        in_specs=[vmem, vmem],
        out_specs=vmem,
    )(x_flat, slab)

    return out[:B, :OP].reshape(B, prediction_horizon, output_size)


def init_params(key, input_size, hidden_size, output_size, prediction_horizon):
    """Deterministic init mimicking PyTorch U(-1/sqrt(H), 1/sqrt(H))."""
    H, I = hidden_size, input_size
    OP = output_size * prediction_horizon
    k = 1.0 / jnp.sqrt(jnp.float32(H))
    keys = jax.random.split(key, 12)

    def u(kk, shape):
        return jax.random.uniform(kk, shape, jnp.float32, -k, k)

    # PyTorch LSTM params: weight_ih_l0 (4H, I), weight_hh_l0 (4H, H), biases (4H,)
    wih1 = u(keys[0], (4 * H, I))
    whh1 = u(keys[1], (4 * H, H))
    bih1 = u(keys[2], (4 * H,))
    bhh1 = u(keys[3], (4 * H,))
    wih2 = u(keys[4], (4 * H, H))
    whh2 = u(keys[5], (4 * H, H))
    bih2 = u(keys[6], (4 * H,))
    bhh2 = u(keys[7], (4 * H,))
    # fc1: (H, H), fc2: (OP, H)
    wfc1 = u(keys[8], (H, H))
    bfc1 = u(keys[9], (H,))
    wfc2 = u(keys[10], (OP, H))
    bfc2 = u(keys[11], (OP,))

    return {
        "wih1_T": wih1.T,                 # (I, 4H)
        "whh1_T": whh1.T,                 # (H, 4H)
        "b1": (bih1 + bhh1)[None, :],     # (1, 4H)
        "wih2_T": wih2.T,                 # (H, 4H)
        "whh2_T": whh2.T,                 # (H, 4H)
        "b2": (bih2 + bhh2)[None, :],     # (1, 4H)
        "wfc1_T": wfc1.T, "bfc1": bfc1[None, :],
        "wfc2_T": wfc2.T, "bfc2": bfc2[None, :],
    }


def reference_forward(x, params, prediction_horizon, output_size):
    """Pure-JAX reference (high-precision matmuls) for correctness checking."""
    B, T, I = x.shape
    H = params["whh1_T"].shape[0]
    hp = lax.Precision.HIGHEST

    def mm(a, b):
        return jnp.dot(a, b, precision=hp)

    def cell(x_t, h, c, wih, whh, b):
        gates = mm(x_t, wih) + mm(h, whh) + b
        i = jax.nn.sigmoid(gates[:, 0 * H:1 * H])
        f = jax.nn.sigmoid(gates[:, 1 * H:2 * H])
        g = jnp.tanh(gates[:, 2 * H:3 * H])
        o = jax.nn.sigmoid(gates[:, 3 * H:4 * H])
        c_new = f * c + i * g
        return o * jnp.tanh(c_new), c_new

    z = jnp.zeros((B, H), jnp.float32)
    h1, c1, h2, c2 = z, z, z, z
    for t in range(T):
        h1, c1 = cell(x[:, t, :], h1, c1,
                      params["wih1_T"], params["whh1_T"], params["b1"])
        h2, c2 = cell(h1, h2, c2,
                      params["wih2_T"], params["whh2_T"], params["b2"])

    fc1 = jnp.maximum(mm(h2, params["wfc1_T"]) + params["bfc1"], 0.0)
    out = mm(fc1, params["wfc2_T"]) + params["bfc2"]
    return out.reshape(B, prediction_horizon, output_size)


if __name__ == "__main__":
    # Small shapes consistent with the module's forward contract.
    batch = 2
    input_size = 4          # joints in
    hidden_size = 32
    output_size = 4         # joints out
    sequence_length = 8
    prediction_horizon = 4

    key = jax.random.PRNGKey(0)
    k_x, k_p = jax.random.split(key)
    x = jax.random.normal(k_x, (batch, sequence_length, input_size), jnp.float32)
    params = init_params(k_p, input_size, hidden_size, output_size,
                         prediction_horizon)
    slab, rows, W, Ip = pack_params(params, input_size, hidden_size,
                                    output_size, prediction_horizon)

    out = imitation_forward(x, slab, rows, W, Ip, hidden_size,
                            prediction_horizon, output_size)
    out = jax.block_until_ready(out)
    assert out.shape == (batch, prediction_horizon, output_size)

    ref = jax.block_until_ready(
        reference_forward(x, params, prediction_horizon, output_size))
    max_err = float(jnp.max(jnp.abs(out - ref)))
    assert max_err < 2e-2, f"mismatch vs reference: max_err={max_err}"

    print("KERNEL_OK")
</pallas_src>

<mosaic_0001>
module attributes {stable_mosaic.version = 11 : i64} {
  func.func @kernel(%arg0: memref<64x8xf32, #tpu.memory_space<vmem>>, %arg1: memref<176x128xf32, #tpu.memory_space<vmem>>, %arg2: memref<8x128xf32, #tpu.memory_space<vmem>>) attributes {dimension_semantics = [], scalar_prefetch = 0 : i64, scratch_operands = 0 : i64, tpu.core_type = #tpu.core_type<tc>} {
    %c0 = arith.constant 0 : index
    %c0_0 = arith.constant 0 : index
    %0 = vector.load %arg1[%c0, %c0_0] : memref<176x128xf32, #tpu.memory_space<vmem>>, vector<8x128xf32>
    %c8 = arith.constant 8 : index
    %c0_1 = arith.constant 0 : index
    %1 = vector.load %arg1[%c8, %c0_1] : memref<176x128xf32, #tpu.memory_space<vmem>>, vector<32x128xf32>
    %c40 = arith.constant 40 : index
    %c0_2 = arith.constant 0 : index
    %2 = vector.load %arg1[%c40, %c0_2] : memref<176x128xf32, #tpu.memory_space<vmem>>, vector<32x128xf32>
    %c72 = arith.constant 72 : index
    %c0_3 = arith.constant 0 : index
    %3 = vector.load %arg1[%c72, %c0_3] : memref<176x128xf32, #tpu.memory_space<vmem>>, vector<32x128xf32>
    %c104 = arith.constant 104 : index
    %c0_4 = arith.constant 0 : index
    %4 = vector.load %arg1[%c104, %c0_4] : memref<176x128xf32, #tpu.memory_space<vmem>>, vector<8x128xf32>
    %c112 = arith.constant 112 : index
    %c0_5 = arith.constant 0 : index
    %5 = vector.load %arg1[%c112, %c0_5] : memref<176x128xf32, #tpu.memory_space<vmem>>, vector<32x128xf32>
    %c144 = arith.constant 144 : index
    %c0_6 = arith.constant 0 : index
    %6 = vector.load %arg1[%c144, %c0_6] : memref<176x128xf32, #tpu.memory_space<vmem>>, vector<32x128xf32>
    %7 = vector.extract_strided_slice %4 {offsets = [0, 0], sizes = [1, 128], strides = [1, 1]} : vector<8x128xf32> to vector<1x128xf32>
    %8 = vector.extract_strided_slice %4 {offsets = [1, 0], sizes = [1, 128], strides = [1, 1]} : vector<8x128xf32> to vector<1x128xf32>
    %9 = vector.shape_cast %8 : vector<1x128xf32> to vector<1x128xf32>
    %10 = vector.broadcast %9 : vector<1x128xf32> to vector<8x128xf32>
    %11 = vector.extract_strided_slice %4 {offsets = [2, 0], sizes = [1, 128], strides = [1, 1]} : vector<8x128xf32> to vector<1x128xf32>
    %12 = vector.extract_strided_slice %4 {offsets = [3, 0], sizes = [1, 128], strides = [1, 1]} : vector<8x128xf32> to vector<1x128xf32>
    %c0_7 = arith.constant 0 : index
    %c0_8 = arith.constant 0 : index
    %13 = vector.load %arg0[%c0_7, %c0_8] : memref<64x8xf32, #tpu.memory_space<vmem>>, vector<64x8xf32>
    %cst = arith.constant dense<0.000000e+00> : vector<64x128xf32>
    %14 = tpu.matmul %13, %0, %cst {dimension_numbers = #tpu.dot_dimension_numbers<[1], [0], [0], [1], [0, 0, 1, 1], [], []>} : vector<64x8xf32>, vector<8x128xf32>, vector<64x128xf32> -> vector<64x128xf32>
    %15 = vector.broadcast %7 : vector<1x128xf32> to vector<64x128xf32>
    %16 = arith.addf %14, %15 : vector<64x128xf32>
    %cst_9 = arith.constant 0.000000e+00 : f32
    %17 = vector.broadcast %cst_9 : f32 to vector<8x32xf32>
    %cst_10 = arith.constant dense<0.000000e+00> : vector<8x128xf32>
    %18 = tpu.matmul %17, %3, %cst_10 {dimension_numbers = #tpu.dot_dimension_numbers<[1], [0], [0], [1], [0, 0, 1, 1], [], []>} : vector<8x32xf32>, vector<32x128xf32>, vector<8x128xf32> -> vector<8x128xf32>
    %19 = vector.extract_strided_slice %16 {offsets = [0, 0], sizes = [8, 128], strides = [1, 1]} : vector<64x128xf32> to vector<8x128xf32>
    %cst_11 = arith.constant dense<0.000000e+00> : vector<8x128xf32>
    %20 = tpu.matmul %17, %1, %cst_11 {dimension_numbers = #tpu.dot_dimension_numbers<[1], [0], [0], [1], [0, 0, 1, 1], [], []>} : vector<8x32xf32>, vector<32x128xf32>, vector<8x128xf32> -> vector<8x128xf32>
    %21 = arith.addf %19, %20 : vector<8x128xf32>
    %22 = arith.negf %21 : vector<8x128xf32>
    %23 = math.exp %22 : vector<8x128xf32>
    %cst_12 = arith.constant 1.000000e+00 : f32
    %24 = vector.broadcast %cst_12 : f32 to vector<8x128xf32>
    %25 = arith.addf %24, %23 : vector<8x128xf32>
    %26 = arith.divf %24, %25 : vector<8x128xf32>
    %27 = math.tanh %21 : vector<8x128xf32>
    %28 = vector.extract_strided_slice %26 {offsets = [0, 0], sizes = [8, 32], strides = [1, 1]} : vector<8x128xf32> to vector<8x32xf32>
    %29 = vector.extract_strided_slice %26 {offsets = [0, 32], sizes = [8, 32], strides = [1, 1]} : vector<8x128xf32> to vector<8x32xf32>
    %30 = vector.extract_strided_slice %27 {offsets = [0, 64], sizes = [8, 32], strides = [1, 1]} : vector<8x128xf32> to vector<8x32xf32>
    %31 = vector.extract_strided_slice %26 {offsets = [0, 96], sizes = [8, 32], strides = [1, 1]} : vector<8x128xf32> to vector<8x32xf32>
    %32 = arith.mulf %29, %17 : vector<8x32xf32>
    %33 = arith.mulf %28, %30 : vector<8x32xf32>
    %34 = arith.addf %32, %33 : vector<8x32xf32>
    %35 = math.tanh %34 : vector<8x32xf32>
    %36 = arith.mulf %31, %35 : vector<8x32xf32>
    %cst_13 = arith.constant dense<0.000000e+00> : vector<8x128xf32>
    %37 = tpu.matmul %36, %2, %cst_13 {dimension_numbers = #tpu.dot_dimension_numbers<[1], [0], [0], [1], [0, 0, 1, 1], [], []>} : vector<8x32xf32>, vector<32x128xf32>, vector<8x128xf32> -> vector<8x128xf32>
    %38 = arith.addf %37, %18 : vector<8x128xf32>
    %39 = arith.addf %38, %10 : vector<8x128xf32>
    %40 = arith.negf %39 : vector<8x128xf32>
    %41 = math.exp %40 : vector<8x128xf32>
    %cst_14 = arith.constant 1.000000e+00 : f32
    %42 = vector.broadcast %cst_14 : f32 to vector<8x128xf32>
    %43 = arith.addf %42, %41 : vector<8x128xf32>
    %44 = arith.divf %42, %43 : vector<8x128xf32>
    %45 = math.tanh %39 : vector<8x128xf32>
    %46 = vector.extract_strided_slice %44 {offsets = [0, 0], sizes = [8, 32], strides = [1, 1]} : vector<8x128xf32> to vector<8x32xf32>
    %47 = vector.extract_strided_slice %44 {offsets = [0, 32], sizes = [8, 32], strides = [1, 1]} : vector<8x128xf32> to vector<8x32xf32>
    %48 = vector.extract_strided_slice %45 {offsets = [0, 64], sizes = [8, 32], strides = [1, 1]} : vector<8x128xf32> to vector<8x32xf32>
    %49 = vector.extract_strided_slice %44 {offsets = [0, 96], sizes = [8, 32], strides = [1, 1]} : vector<8x128xf32> to vector<8x32xf32>
    %50 = arith.mulf %47, %17 : vector<8x32xf32>
    %51 = arith.mulf %46, %48 : vector<8x32xf32>
    %52 = arith.addf %50, %51 : vector<8x32xf32>
    %53 = math.tanh %52 : vector<8x32xf32>
    %54 = arith.mulf %49, %53 : vector<8x32xf32>
    %cst_15 = arith.constant dense<0.000000e+00> : vector<8x128xf32>
    %55 = tpu.matmul %54, %3, %cst_15 {dimension_numbers = #tpu.dot_dimension_numbers<[1], [0], [0], [1], [0, 0, 1, 1], [], []>} : vector<8x32xf32>, vector<32x128xf32>, vector<8x128xf32> -> vector<8x128xf32>
    %56 = vector.extract_strided_slice %16 {offsets = [8, 0], sizes = [8, 128], strides = [1, 1]} : vector<64x128xf32> to vector<8x128xf32>
    %cst_16 = arith.constant dense<0.000000e+00> : vector<8x128xf32>
    %57 = tpu.matmul %36, %1, %cst_16 {dimension_numbers = #tpu.dot_dimension_numbers<[1], [0], [0], [1], [0, 0, 1, 1], [], []>} : vector<8x32xf32>, vector<32x128xf32>, vector<8x128xf32> -> vector<8x128xf32>
    %58 = arith.addf %56, %57 : vector<8x128xf32>
    %59 = arith.negf %58 : vector<8x128xf32>
    %60 = math.exp %59 : vector<8x128xf32>
    %cst_17 = arith.constant 1.000000e+00 : f32
    %61 = vector.broadcast %cst_17 : f32 to vector<8x128xf32>
    %62 = arith.addf %61, %60 : vector<8x128xf32>
    %63 = arith.divf %61, %62 : vector<8x128xf32>
    %64 = math.tanh %58 : vector<8x128xf32>
    %65 = vector.extract_strided_slice %63 {offsets = [0, 0], sizes = [8, 32], strides = [1, 1]} : vector<8x128xf32> to vector<8x32xf32>
    %66 = vector.extract_strided_slice %63 {offsets = [0, 32], sizes = [8, 32], strides = [1, 1]} : vector<8x128xf32> to vector<8x32xf32>
    %67 = vector.extract_strided_slice %64 {offsets = [0, 64], sizes = [8, 32], strides = [1, 1]} : vector<8x128xf32> to vector<8x32xf32>
    %68 = vector.extract_strided_slice %63 {offsets = [0, 96], sizes = [8, 32], strides = [1, 1]} : vector<8x128xf32> to vector<8x32xf32>
    %69 = arith.mulf %66, %34 : vector<8x32xf32>
    %70 = arith.mulf %65, %67 : vector<8x32xf32>
    %71 = arith.addf %69, %70 : vector<8x32xf32>
    %72 = math.tanh %71 : vector<8x32xf32>
    %73 = arith.mulf %68, %72 : vector<8x32xf32>
    %cst_18 = arith.constant dense<0.000000e+00> : vector<8x128xf32>
    %74 = tpu.matmul %73, %2, %cst_18 {dimension_numbers = #tpu.dot_dimension_numbers<[1], [0], [0], [1], [0, 0, 1, 1], [], []>} : vector<8x32xf32>, vector<32x128xf32>, vector<8x128xf32> -> vector<8x128xf32>
    %75 = arith.addf %74, %55 : vector<8x128xf32>
    %76 = arith.addf %75, %10 : vector<8x128xf32>
    %77 = arith.negf %76 : vector<8x128xf32>
    %78 = math.exp %77 : vector<8x128xf32>
    %cst_19 = arith.constant 1.000000e+00 : f32
    %79 = vector.broadcast %cst_19 : f32 to vector<8x128xf32>
    %80 = arith.addf %79, %78 : vector<8x128xf32>
    %81 = arith.divf %79, %80 : vector<8x128xf32>
    %82 = math.tanh %76 : vector<8x128xf32>
    %83 = vector.extract_strided_slice %81 {offsets = [0, 0], sizes = [8, 32], strides = [1, 1]} : vector<8x128xf32> to vector<8x32xf32>
    %84 = vector.extract_strided_slice %81 {offsets = [0, 32], sizes = [8, 32], strides = [1, 1]} : vector<8x128xf32> to vector<8x32xf32>
    %85 = vector.extract_strided_slice %82 {offsets = [0, 64], sizes = [8, 32], strides = [1, 1]} : vector<8x128xf32> to vector<8x32xf32>
    %86 = vector.extract_strided_slice %81 {offsets = [0, 96], sizes = [8, 32], strides = [1, 1]} : vector<8x128xf32> to vector<8x32xf32>
    %87 = arith.mulf %84, %52 : vector<8x32xf32>
    %88 = arith.mulf %83, %85 : vector<8x32xf32>
    %89 = arith.addf %87, %88 : vector<8x32xf32>
    %90 = math.tanh %89 : vector<8x32xf32>
    %91 = arith.mulf %86, %90 : vector<8x32xf32>
    %cst_20 = arith.constant dense<0.000000e+00> : vector<8x128xf32>
    %92 = tpu.matmul %91, %3, %cst_20 {dimension_numbers = #tpu.dot_dimension_numbers<[1], [0], [0], [1], [0, 0, 1, 1], [], []>} : vector<8x32xf32>, vector<32x128xf32>, vector<8x128xf32> -> vector<8x128xf32>
    %93 = vector.extract_strided_slice %16 {offsets = [16, 0], sizes = [8, 128], strides = [1, 1]} : vector<64x128xf32> to vector<8x128xf32>
    %cst_21 = arith.constant dense<0.000000e+00> : vector<8x128xf32>
    %94 = tpu.matmul %73, %1, %cst_21 {dimension_numbers = #tpu.dot_dimension_numbers<[1], [0], [0], [1], [0, 0, 1, 1], [], []>} : vector<8x32xf32>, vector<32x128xf32>, vector<8x128xf32> -> vector<8x128xf32>
    %95 = arith.addf %93, %94 : vector<8x128xf32>
    %96 = arith.negf %95 : vector<8x128xf32>
    %97 = math.exp %96 : vector<8x128xf32>
    %cst_22 = arith.constant 1.000000e+00 : f32
    %98 = vector.broadcast %cst_22 : f32 to vector<8x128xf32>
    %99 = arith.addf %98, %97 : vector<8x128xf32>
    %100 = arith.divf %98, %99 : vector<8x128xf32>
    %101 = math.tanh %95 : vector<8x128xf32>
    %102 = vector.extract_strided_slice %100 {offsets = [0, 0], sizes = [8, 32], strides = [1, 1]} : vector<8x128xf32> to vector<8x32xf32>
    %103 = vector.extract_strided_slice %100 {offsets = [0, 32], sizes = [8, 32], strides = [1, 1]} : vector<8x128xf32> to vector<8x32xf32>
    %104 = vector.extract_strided_slice %101 {offsets = [0, 64], sizes = [8, 32], strides = [1, 1]} : vector<8x128xf32> to vector<8x32xf32>
    %105 = vector.extract_strided_slice %100 {offsets = [0, 96], sizes = [8, 32], strides = [1, 1]} : vector<8x128xf32> to vector<8x32xf32>
    %106 = arith.mulf %103, %71 : vector<8x32xf32>
    %107 = arith.mulf %102, %104 : vector<8x32xf32>
    %108 = arith.addf %106, %107 : vector<8x32xf32>
    %109 = math.tanh %108 : vector<8x32xf32>
    %110 = arith.mulf %105, %109 : vector<8x32xf32>
    %cst_23 = arith.constant dense<0.000000e+00> : vector<8x128xf32>
    %111 = tpu.matmul %110, %2, %cst_23 {dimension_numbers = #tpu.dot_dimension_numbers<[1], [0], [0], [1], [0, 0, 1, 1], [], []>} : vector<8x32xf32>, vector<32x128xf32>, vector<8x128xf32> -> vector<8x128xf32>
    %112 = arith.addf %111, %92 : vector<8x128xf32>
    %113 = arith.addf %112, %10 : vector<8x128xf32>
    %114 = arith.negf %113 : vector<8x128xf32>
    %115 = math.exp %114 : vector<8x128xf32>
    %cst_24 = arith.constant 1.000000e+00 : f32
    %116 = vector.broadcast %cst_24 : f32 to vector<8x128xf32>
    %117 = arith.addf %116, %115 : vector<8x128xf32>
    %118 = arith.divf %116, %117 : vector<8x128xf32>
    %119 = math.tanh %113 : vector<8x128xf32>
    %120 = vector.extract_strided_slice %118 {offsets = [0, 0], sizes = [8, 32], strides = [1, 1]} : vector<8x128xf32> to vector<8x32xf32>
    %121 = vector.extract_strided_slice %118 {offsets = [0, 32], sizes = [8, 32], strides = [1, 1]} : vector<8x128xf32> to vector<8x32xf32>
    %122 = vector.extract_strided_slice %119 {offsets = [0, 64], sizes = [8, 32], strides = [1, 1]} : vector<8x128xf32> to vector<8x32xf32>
    %123 = vector.extract_strided_slice %118 {offsets = [0, 96], sizes = [8, 32], strides = [1, 1]} : vector<8x128xf32> to vector<8x32xf32>
    %124 = arith.mulf %121, %89 : vector<8x32xf32>
    %125 = arith.mulf %120, %122 : vector<8x32xf32>
    %126 = arith.addf %124, %125 : vector<8x32xf32>
    %127 = math.tanh %126 : vector<8x32xf32>
    %128 = arith.mulf %123, %127 : vector<8x32xf32>
    %cst_25 = arith.constant dense<0.000000e+00> : vector<8x128xf32>
    %129 = tpu.matmul %128, %3, %cst_25 {dimension_numbers = #tpu.dot_dimension_numbers<[1], [0], [0], [1], [0, 0, 1, 1], [], []>} : vector<8x32xf32>, vector<32x128xf32>, vector<8x128xf32> -> vector<8x128xf32>
    %130 = vector.extract_strided_slice %16 {offsets = [24, 0], sizes = [8, 128], strides = [1, 1]} : vector<64x128xf32> to vector<8x128xf32>
    %cst_26 = arith.constant dense<0.000000e+00> : vector<8x128xf32>
    %131 = tpu.matmul %110, %1, %cst_26 {dimension_numbers = #tpu.dot_dimension_numbers<[1], [0], [0], [1], [0, 0, 1, 1], [], []>} : vector<8x32xf32>, vector<32x128xf32>, vector<8x128xf32> -> vector<8x128xf32>
    %132 = arith.addf %130, %131 : vector<8x128xf32>
    %133 = arith.negf %132 : vector<8x128xf32>
    %134 = math.exp %133 : vector<8x128xf32>
    %cst_27 = arith.constant 1.000000e+00 : f32
    %135 = vector.broadcast %cst_27 : f32 to vector<8x128xf32>
    %136 = arith.addf %135, %134 : vector<8x128xf32>
    %137 = arith.divf %135, %136 : vector<8x128xf32>
    %138 = math.tanh %132 : vector<8x128xf32>
    %139 = vector.extract_strided_slice %137 {offsets = [0, 0], sizes = [8, 32], strides = [1, 1]} : vector<8x128xf32> to vector<8x32xf32>
    %140 = vector.extract_strided_slice %137 {offsets = [0, 32], sizes = [8, 32], strides = [1, 1]} : vector<8x128xf32> to vector<8x32xf32>
    %141 = vector.extract_strided_slice %138 {offsets = [0, 64], sizes = [8, 32], strides = [1, 1]} : vector<8x128xf32> to vector<8x32xf32>
    %142 = vector.extract_strided_slice %137 {offsets = [0, 96], sizes = [8, 32], strides = [1, 1]} : vector<8x128xf32> to vector<8x32xf32>
    %143 = arith.mulf %140, %108 : vector<8x32xf32>
    %144 = arith.mulf %139, %141 : vector<8x32xf32>
    %145 = arith.addf %143, %144 : vector<8x32xf32>
    %146 = math.tanh %145 : vector<8x32xf32>
    %147 = arith.mulf %142, %146 : vector<8x32xf32>
    %cst_28 = arith.constant dense<0.000000e+00> : vector<8x128xf32>
    %148 = tpu.matmul %147, %2, %cst_28 {dimension_numbers = #tpu.dot_dimension_numbers<[1], [0], [0], [1], [0, 0, 1, 1], [], []>} : vector<8x32xf32>, vector<32x128xf32>, vector<8x128xf32> -> vector<8x128xf32>
    %149 = arith.addf %148, %129 : vector<8x128xf32>
    %150 = arith.addf %149, %10 : vector<8x128xf32>
    %151 = arith.negf %150 : vector<8x128xf32>
    %152 = math.exp %151 : vector<8x128xf32>
    %cst_29 = arith.constant 1.000000e+00 : f32
    %153 = vector.broadcast %cst_29 : f32 to vector<8x128xf32>
    %154 = arith.addf %153, %152 : vector<8x128xf32>
    %155 = arith.divf %153, %154 : vector<8x128xf32>
    %156 = math.tanh %150 : vector<8x128xf32>
    %157 = vector.extract_strided_slice %155 {offsets = [0, 0], sizes = [8, 32], strides = [1, 1]} : vector<8x128xf32> to vector<8x32xf32>
    %158 = vector.extract_strided_slice %155 {offsets = [0, 32], sizes = [8, 32], strides = [1, 1]} : vector<8x128xf32> to vector<8x32xf32>
    %159 = vector.extract_strided_slice %156 {offsets = [0, 64], sizes = [8, 32], strides = [1, 1]} : vector<8x128xf32> to vector<8x32xf32>
    %160 = vector.extract_strided_slice %155 {offsets = [0, 96], sizes = [8, 32], strides = [1, 1]} : vector<8x128xf32> to vector<8x32xf32>
    %161 = arith.mulf %158, %126 : vector<8x32xf32>
    %162 = arith.mulf %157, %159 : vector<8x32xf32>
    %163 = arith.addf %161, %162 : vector<8x32xf32>
    %164 = math.tanh %163 : vector<8x32xf32>
    %165 = arith.mulf %160, %164 : vector<8x32xf32>
    %cst_30 = arith.constant dense<0.000000e+00> : vector<8x128xf32>
    %166 = tpu.matmul %165, %3, %cst_30 {dimension_numbers = #tpu.dot_dimension_numbers<[1], [0], [0], [1], [0, 0, 1, 1], [], []>} : vector<8x32xf32>, vector<32x128xf32>, vector<8x128xf32> -> vector<8x128xf32>
    %167 = vector.extract_strided_slice %16 {offsets = [32, 0], sizes = [8, 128], strides = [1, 1]} : vector<64x128xf32> to vector<8x128xf32>
    %cst_31 = arith.constant dense<0.000000e+00> : vector<8x128xf32>
    %168 = tpu.matmul %147, %1, %cst_31 {dimension_numbers = #tpu.dot_dimension_numbers<[1], [0], [0], [1], [0, 0, 1, 1], [], []>} : vector<8x32xf32>, vector<32x128xf32>, vector<8x128xf32> -> vector<8x128xf32>
    %169 = arith.addf %167, %168 : vector<8x128xf32>
    %170 = arith.negf %169 : vector<8x128xf32>
    %171 = math.exp %170 : vector<8x128xf32>
    %cst_32 = arith.constant 1.000000e+00 : f32
    %172 = vector.broadcast %cst_32 : f32 to vector<8x128xf32>
    %173 = arith.addf %172, %171 : vector<8x128xf32>
    %174 = arith.divf %172, %173 : vector<8x128xf32>
    %175 = math.tanh %169 : vector<8x128xf32>
    %176 = vector.extract_strided_slice %174 {offsets = [0, 0], sizes = [8, 32], strides = [1, 1]} : vector<8x128xf32> to vector<8x32xf32>
    %177 = vector.extract_strided_slice %174 {offsets = [0, 32], sizes = [8, 32], strides = [1, 1]} : vector<8x128xf32> to vector<8x32xf32>
    %178 = vector.extract_strided_slice %175 {offsets = [0, 64], sizes = [8, 32], strides = [1, 1]} : vector<8x128xf32> to vector<8x32xf32>
    %179 = vector.extract_strided_slice %174 {offsets = [0, 96], sizes = [8, 32], strides = [1, 1]} : vector<8x128xf32> to vector<8x32xf32>
    %180 = arith.mulf %177, %145 : vector<8x32xf32>
    %181 = arith.mulf %176, %178 : vector<8x32xf32>
    %182 = arith.addf %180, %181 : vector<8x32xf32>
    %183 = math.tanh %182 : vector<8x32xf32>
    %184 = arith.mulf %179, %183 : vector<8x32xf32>
    %cst_33 = arith.constant dense<0.000000e+00> : vector<8x128xf32>
    %185 = tpu.matmul %184, %2, %cst_33 {dimension_numbers = #tpu.dot_dimension_numbers<[1], [0], [0], [1], [0, 0, 1, 1], [], []>} : vector<8x32xf32>, vector<32x128xf32>, vector<8x128xf32> -> vector<8x128xf32>
    %186 = arith.addf %185, %166 : vector<8x128xf32>
    %187 = arith.addf %186, %10 : vector<8x128xf32>
    %188 = arith.negf %187 : vector<8x128xf32>
    %189 = math.exp %188 : vector<8x128xf32>
    %cst_34 = arith.constant 1.000000e+00 : f32
    %190 = vector.broadcast %cst_34 : f32 to vector<8x128xf32>
    %191 = arith.addf %190, %189 : vector<8x128xf32>
    %192 = arith.divf %190, %191 : vector<8x128xf32>
    %193 = math.tanh %187 : vector<8x128xf32>
    %194 = vector.extract_strided_slice %192 {offsets = [0, 0], sizes = [8, 32], strides = [1, 1]} : vector<8x128xf32> to vector<8x32xf32>
    %195 = vector.extract_strided_slice %192 {offsets = [0, 32], sizes = [8, 32], strides = [1, 1]} : vector<8x128xf32> to vector<8x32xf32>
    %196 = vector.extract_strided_slice %193 {offsets = [0, 64], sizes = [8, 32], strides = [1, 1]} : vector<8x128xf32> to vector<8x32xf32>
    %197 = vector.extract_strided_slice %192 {offsets = [0, 96], sizes = [8, 32], strides = [1, 1]} : vector<8x128xf32> to vector<8x32xf32>
    %198 = arith.mulf %195, %163 : vector<8x32xf32>
    %199 = arith.mulf %194, %196 : vector<8x32xf32>
    %200 = arith.addf %198, %199 : vector<8x32xf32>
    %201 = math.tanh %200 : vector<8x32xf32>
    %202 = arith.mulf %197, %201 : vector<8x32xf32>
    %cst_35 = arith.constant dense<0.000000e+00> : vector<8x128xf32>
    %203 = tpu.matmul %202, %3, %cst_35 {dimension_numbers = #tpu.dot_dimension_numbers<[1], [0], [0], [1], [0, 0, 1, 1], [], []>} : vector<8x32xf32>, vector<32x128xf32>, vector<8x128xf32> -> vector<8x128xf32>
    %204 = vector.extract_strided_slice %16 {offsets = [40, 0], sizes = [8, 128], strides = [1, 1]} : vector<64x128xf32> to vector<8x128xf32>
    %cst_36 = arith.constant dense<0.000000e+00> : vector<8x128xf32>
    %205 = tpu.matmul %184, %1, %cst_36 {dimension_numbers = #tpu.dot_dimension_numbers<[1], [0], [0], [1], [0, 0, 1, 1], [], []>} : vector<8x32xf32>, vector<32x128xf32>, vector<8x128xf32> -> vector<8x128xf32>
    %206 = arith.addf %204, %205 : vector<8x128xf32>
    %207 = arith.negf %206 : vector<8x128xf32>
    %208 = math.exp %207 : vector<8x128xf32>
    %cst_37 = arith.constant 1.000000e+00 : f32
    %209 = vector.broadcast %cst_37 : f32 to vector<8x128xf32>
    %210 = arith.addf %209, %208 : vector<8x128xf32>
    %211 = arith.divf %209, %210 : vector<8x128xf32>
    %212 = math.tanh %206 : vector<8x128xf32>
    %213 = vector.extract_strided_slice %211 {offsets = [0, 0], sizes = [8, 32], strides = [1, 1]} : vector<8x128xf32> to vector<8x32xf32>
    %214 = vector.extract_strided_slice %211 {offsets = [0, 32], sizes = [8, 32], strides = [1, 1]} : vector<8x128xf32> to vector<8x32xf32>
    %215 = vector.extract_strided_slice %212 {offsets = [0, 64], sizes = [8, 32], strides = [1, 1]} : vector<8x128xf32> to vector<8x32xf32>
    %216 = vector.extract_strided_slice %211 {offsets = [0, 96], sizes = [8, 32], strides = [1, 1]} : vector<8x128xf32> to vector<8x32xf32>
    %217 = arith.mulf %214, %182 : vector<8x32xf32>
    %218 = arith.mulf %213, %215 : vector<8x32xf32>
    %219 = arith.addf %217, %218 : vector<8x32xf32>
    %220 = math.tanh %219 : vector<8x32xf32>
    %221 = arith.mulf %216, %220 : vector<8x32xf32>
    %cst_38 = arith.constant dense<0.000000e+00> : vector<8x128xf32>
    %222 = tpu.matmul %221, %2, %cst_38 {dimension_numbers = #tpu.dot_dimension_numbers<[1], [0], [0], [1], [0, 0, 1, 1], [], []>} : vector<8x32xf32>, vector<32x128xf32>, vector<8x128xf32> -> vector<8x128xf32>
    %223 = arith.addf %222, %203 : vector<8x128xf32>
    %224 = arith.addf %223, %10 : vector<8x128xf32>
    %225 = arith.negf %224 : vector<8x128xf32>
    %226 = math.exp %225 : vector<8x128xf32>
    %cst_39 = arith.constant 1.000000e+00 : f32
    %227 = vector.broadcast %cst_39 : f32 to vector<8x128xf32>
    %228 = arith.addf %227, %226 : vector<8x128xf32>
    %229 = arith.divf %227, %228 : vector<8x128xf32>
    %230 = math.tanh %224 : vector<8x128xf32>
    %231 = vector.extract_strided_slice %229 {offsets = [0, 0], sizes = [8, 32], strides = [1, 1]} : vector<8x128xf32> to vector<8x32xf32>
    %232 = vector.extract_strided_slice %229 {offsets = [0, 32], sizes = [8, 32], strides = [1, 1]} : vector<8x128xf32> to vector<8x32xf32>
    %233 = vector.extract_strided_slice %230 {offsets = [0, 64], sizes = [8, 32], strides = [1, 1]} : vector<8x128xf32> to vector<8x32xf32>
    %234 = vector.extract_strided_slice %229 {offsets = [0, 96], sizes = [8, 32], strides = [1, 1]} : vector<8x128xf32> to vector<8x32xf32>
    %235 = arith.mulf %232, %200 : vector<8x32xf32>
    %236 = arith.mulf %231, %233 : vector<8x32xf32>
    %237 = arith.addf %235, %236 : vector<8x32xf32>
    %238 = math.tanh %237 : vector<8x32xf32>
    %239 = arith.mulf %234, %238 : vector<8x32xf32>
    %cst_40 = arith.constant dense<0.000000e+00> : vector<8x128xf32>
    %240 = tpu.matmul %239, %3, %cst_40 {dimension_numbers = #tpu.dot_dimension_numbers<[1], [0], [0], [1], [0, 0, 1, 1], [], []>} : vector<8x32xf32>, vector<32x128xf32>, vector<8x128xf32> -> vector<8x128xf32>
    %241 = vector.extract_strided_slice %16 {offsets = [48, 0], sizes = [8, 128], strides = [1, 1]} : vector<64x128xf32> to vector<8x128xf32>
    %cst_41 = arith.constant dense<0.000000e+00> : vector<8x128xf32>
    %242 = tpu.matmul %221, %1, %cst_41 {dimension_numbers = #tpu.dot_dimension_numbers<[1], [0], [0], [1], [0, 0, 1, 1], [], []>} : vector<8x32xf32>, vector<32x128xf32>, vector<8x128xf32> -> vector<8x128xf32>
    %243 = arith.addf %241, %242 : vector<8x128xf32>
    %244 = arith.negf %243 : vector<8x128xf32>
    %245 = math.exp %244 : vector<8x128xf32>
    %cst_42 = arith.constant 1.000000e+00 : f32
    %246 = vector.broadcast %cst_42 : f32 to vector<8x128xf32>
    %247 = arith.addf %246, %245 : vector<8x128xf32>
    %248 = arith.divf %246, %247 : vector<8x128xf32>
    %249 = math.tanh %243 : vector<8x128xf32>
    %250 = vector.extract_strided_slice %248 {offsets = [0, 0], sizes = [8, 32], strides = [1, 1]} : vector<8x128xf32> to vector<8x32xf32>
    %251 = vector.extract_strided_slice %248 {offsets = [0, 32], sizes = [8, 32], strides = [1, 1]} : vector<8x128xf32> to vector<8x32xf32>
    %252 = vector.extract_strided_slice %249 {offsets = [0, 64], sizes = [8, 32], strides = [1, 1]} : vector<8x128xf32> to vector<8x32xf32>
    %253 = vector.extract_strided_slice %248 {offsets = [0, 96], sizes = [8, 32], strides = [1, 1]} : vector<8x128xf32> to vector<8x32xf32>
    %254 = arith.mulf %251, %219 : vector<8x32xf32>
    %255 = arith.mulf %250, %252 : vector<8x32xf32>
    %256 = arith.addf %254, %255 : vector<8x32xf32>
    %257 = math.tanh %256 : vector<8x32xf32>
    %258 = arith.mulf %253, %257 : vector<8x32xf32>
    %cst_43 = arith.constant dense<0.000000e+00> : vector<8x128xf32>
    %259 = tpu.matmul %258, %2, %cst_43 {dimension_numbers = #tpu.dot_dimension_numbers<[1], [0], [0], [1], [0, 0, 1, 1], [], []>} : vector<8x32xf32>, vector<32x128xf32>, vector<8x128xf32> -> vector<8x128xf32>
    %260 = arith.addf %259, %240 : vector<8x128xf32>
    %261 = arith.addf %260, %10 : vector<8x128xf32>
    %262 = arith.negf %261 : vector<8x128xf32>
    %263 = math.exp %262 : vector<8x128xf32>
    %cst_44 = arith.constant 1.000000e+00 : f32
    %264 = vector.broadcast %cst_44 : f32 to vector<8x128xf32>
    %265 = arith.addf %264, %263 : vector<8x128xf32>
    %266 = arith.divf %264, %265 : vector<8x128xf32>
    %267 = math.tanh %261 : vector<8x128xf32>
    %268 = vector.extract_strided_slice %266 {offsets = [0, 0], sizes = [8, 32], strides = [1, 1]} : vector<8x128xf32> to vector<8x32xf32>
    %269 = vector.extract_strided_slice %266 {offsets = [0, 32], sizes = [8, 32], strides = [1, 1]} : vector<8x128xf32> to vector<8x32xf32>
    %270 = vector.extract_strided_slice %267 {offsets = [0, 64], sizes = [8, 32], strides = [1, 1]} : vector<8x128xf32> to vector<8x32xf32>
    %271 = vector.extract_strided_slice %266 {offsets = [0, 96], sizes = [8, 32], strides = [1, 1]} : vector<8x128xf32> to vector<8x32xf32>
    %272 = arith.mulf %269, %237 : vector<8x32xf32>
    %273 = arith.mulf %268, %270 : vector<8x32xf32>
    %274 = arith.addf %272, %273 : vector<8x32xf32>
    %275 = math.tanh %274 : vector<8x32xf32>
    %276 = arith.mulf %271, %275 : vector<8x32xf32>
    %cst_45 = arith.constant dense<0.000000e+00> : vector<8x128xf32>
    %277 = tpu.matmul %276, %3, %cst_45 {dimension_numbers = #tpu.dot_dimension_numbers<[1], [0], [0], [1], [0, 0, 1, 1], [], []>} : vector<8x32xf32>, vector<32x128xf32>, vector<8x128xf32> -> vector<8x128xf32>
    %278 = vector.extract_strided_slice %16 {offsets = [56, 0], sizes = [8, 128], strides = [1, 1]} : vector<64x128xf32> to vector<8x128xf32>
    %cst_46 = arith.constant dense<0.000000e+00> : vector<8x128xf32>
    %279 = tpu.matmul %258, %1, %cst_46 {dimension_numbers = #tpu.dot_dimension_numbers<[1], [0], [0], [1], [0, 0, 1, 1], [], []>} : vector<8x32xf32>, vector<32x128xf32>, vector<8x128xf32> -> vector<8x128xf32>
    %280 = arith.addf %278, %279 : vector<8x128xf32>
    %281 = arith.negf %280 : vector<8x128xf32>
    %282 = math.exp %281 : vector<8x128xf32>
    %cst_47 = arith.constant 1.000000e+00 : f32
    %283 = vector.broadcast %cst_47 : f32 to vector<8x128xf32>
    %284 = arith.addf %283, %282 : vector<8x128xf32>
    %285 = arith.divf %283, %284 : vector<8x128xf32>
    %286 = math.tanh %280 : vector<8x128xf32>
    %287 = vector.extract_strided_slice %285 {offsets = [0, 0], sizes = [8, 32], strides = [1, 1]} : vector<8x128xf32> to vector<8x32xf32>
    %288 = vector.extract_strided_slice %285 {offsets = [0, 32], sizes = [8, 32], strides = [1, 1]} : vector<8x128xf32> to vector<8x32xf32>
    %289 = vector.extract_strided_slice %286 {offsets = [0, 64], sizes = [8, 32], strides = [1, 1]} : vector<8x128xf32> to vector<8x32xf32>
    %290 = vector.extract_strided_slice %285 {offsets = [0, 96], sizes = [8, 32], strides = [1, 1]} : vector<8x128xf32> to vector<8x32xf32>
    %291 = arith.mulf %288, %256 : vector<8x32xf32>
    %292 = arith.mulf %287, %289 : vector<8x32xf32>
    %293 = arith.addf %291, %292 : vector<8x32xf32>
    %294 = math.tanh %293 : vector<8x32xf32>
    %295 = arith.mulf %290, %294 : vector<8x32xf32>
    %cst_48 = arith.constant dense<0.000000e+00> : vector<8x128xf32>
    %296 = tpu.matmul %295, %2, %cst_48 {dimension_numbers = #tpu.dot_dimension_numbers<[1], [0], [0], [1], [0, 0, 1, 1], [], []>} : vector<8x32xf32>, vector<32x128xf32>, vector<8x128xf32> -> vector<8x128xf32>
    %297 = arith.addf %296, %277 : vector<8x128xf32>
    %298 = arith.addf %297, %10 : vector<8x128xf32>
    %299 = arith.negf %298 : vector<8x128xf32>
    %300 = math.exp %299 : vector<8x128xf32>
    %cst_49 = arith.constant 1.000000e+00 : f32
    %301 = vector.broadcast %cst_49 : f32 to vector<8x128xf32>
    %302 = arith.addf %301, %300 : vector<8x128xf32>
    %303 = arith.divf %301, %302 : vector<8x128xf32>
    %304 = math.tanh %298 : vector<8x128xf32>
    %305 = vector.extract_strided_slice %303 {offsets = [0, 0], sizes = [8, 32], strides = [1, 1]} : vector<8x128xf32> to vector<8x32xf32>
    %306 = vector.extract_strided_slice %303 {offsets = [0, 32], sizes = [8, 32], strides = [1, 1]} : vector<8x128xf32> to vector<8x32xf32>
    %307 = vector.extract_strided_slice %304 {offsets = [0, 64], sizes = [8, 32], strides = [1, 1]} : vector<8x128xf32> to vector<8x32xf32>
    %308 = vector.extract_strided_slice %303 {offsets = [0, 96], sizes = [8, 32], strides = [1, 1]} : vector<8x128xf32> to vector<8x32xf32>
    %309 = arith.mulf %306, %274 : vector<8x32xf32>
    %310 = arith.mulf %305, %307 : vector<8x32xf32>
    %311 = arith.addf %309, %310 : vector<8x32xf32>
    %312 = math.tanh %311 : vector<8x32xf32>
    %313 = arith.mulf %308, %312 : vector<8x32xf32>
    %cst_50 = arith.constant dense<0.000000e+00> : vector<8x128xf32>
    %314 = tpu.matmul %313, %5, %cst_50 {dimension_numbers = #tpu.dot_dimension_numbers<[1], [0], [0], [1], [0, 0, 1, 1], [], []>} : vector<8x32xf32>, vector<32x128xf32>, vector<8x128xf32> -> vector<8x128xf32>
    %315 = vector.broadcast %11 : vector<1x128xf32> to vector<8x128xf32>
    %316 = arith.addf %314, %315 : vector<8x128xf32>
    %cst_51 = arith.constant 0.000000e+00 : f32
    %317 = vector.broadcast %cst_51 : f32 to vector<8x128xf32>
    %318 = arith.maximumf %316, %317 : vector<8x128xf32>
    %319 = vector.extract_strided_slice %318 {offsets = [0, 0], sizes = [8, 32], strides = [1, 1]} : vector<8x128xf32> to vector<8x32xf32>
    %cst_52 = arith.constant dense<0.000000e+00> : vector<8x128xf32>
    %320 = tpu.matmul %319, %6, %cst_52 {dimension_numbers = #tpu.dot_dimension_numbers<[1], [0], [0], [1], [0, 0, 1, 1], [], []>} : vector<8x32xf32>, vector<32x128xf32>, vector<8x128xf32> -> vector<8x128xf32>
    %321 = vector.broadcast %12 : vector<1x128xf32> to vector<8x128xf32>
    %322 = arith.addf %320, %321 : vector<8x128xf32>
    %c0_53 = arith.constant 0 : index
    %c0_54 = arith.constant 0 : index
    %323 = vector.load %arg2[%c0_53, %c0_54] : memref<8x128xf32, #tpu.memory_space<vmem>>, vector<8x128xf32>
    tpu.vector_store %arg2[%c0_53, %c0_54], %322 {strides = array<i32>} : memref<8x128xf32, #tpu.memory_space<vmem>>, vector<8x128xf32>,
    return
  }
}

</mosaic_0001>

<bundles_post_ra>
// kernel: tpu_custom_call.1
= control target key start
LH: loop header
LB: loop body
LE: loop exit
PB: predicated region body
PF: predicated region fallthrough
CT: control target
= control target key end

     0   :  { %7 = vsyncpa [#allocation3], 0  ;;  %s3795_s0 = inlined_call_operand.vmem [shape: f32[64,8], index: 0, kind: input, shape index: {}]   ;;  %s3796_s1 = inlined_call_operand.hbm [shape: f32[176,128], index: 1, kind: input, shape index: {}]   ;;  %s3797_s2 = inlined_call_operand.hbm [shape: f32[8,128], index: 2, kind: output, shape index: {}]  }
   0x1   :  { %8 = vsyncpa [#allocation4], 0  ;;  %s3355_s9 = smov [#allocation2]   ;;  %s3307_s13 = scalar_lea.hbm %s3796_s1, 2816 }
   0x2   :  { %s16_s10 = sshll.u32 %s3355_s9, 4  ;;  %p3308_p0 = scmp.ne.s32.totalorder %s3796_s1, %s3307_s13  ;;  %s17_s10 = int_to_ptr.vmem [resolvable:$true] %s16_s10 }
   0x3   :  { %p3311_p1 = scmp.lt.u32.totalorder %s3307_s13, %s3796_s1 }
   0x5   :  { %p3313_p2 = pnand %p3311_p1, %p3308_p0 }
   0x7   :  { %3316 = shalt.err (!%p3313_p2)
}
   0x8   :  { %s3317_s18 = scalar_lea.vmem %s17_s10, 2816  ;;  %p3322_p4 = scmp.lt.s32.totalorder %s17_s10, %s17_s10 }
   0x9   :  { %p3318_p3 = scmp.ne.s32.totalorder %s17_s10, %s3317_s18  ;;  %p3323_p5 = scmp.lt.s32.totalorder %s3317_s18, %s3317_s18 }
   0xb   :  { %p3324_p6 = por %p3323_p5, %p3322_p4 }
   0xd   :  { %p3325_p7 = pnand %p3324_p6, %p3318_p3 }
   0xf   :  { %3328 = shalt.err (!%p3325_p7)
}
  0x10   :  { %s3356_s19 = smov 128   ;;  %s3357_s20 = smov 8  }
  0x11   :  { %22 = dma.hbm_to_vmem [thread:$0]  %s3796_s1, 2816, %s17_s10, [#allocation3], %s3356_s19, %s3356_s19, %s3357_s20  }
  0x12   :  { %3351 = dma.done.wait [#allocation3], 2816  }
  0x13   :  { %3352 = vsyncadd [#allocation3], 4294964480  ;;  %v3358_v0 = vmov 0.0|0.0   ;;  %vm3359_vm0 = vmmov 0   ;;  %v3360_v1 = vmov 0.0   ;;  %v35_v2 = vld [vmem:[#allocation2 + $0x48] sm:$0xff]  ;;  %v48_v17 = vlaneseq }
  0x14   :  { %3013 = vmatprep.subr.bf16.mxu1 %v3358_v0  ;;  %2735 = vmatprep.mubr.msk.f32.mxu1 %vm3359_vm0, %v3360_v1  ;;  %v36_v3 = vld [vmem:[#allocation2 + $0x50] sm:$0xff]  ;;  %v37_v4 = vld [vmem:[#allocation2 + $0x58] sm:$0xff]  ;;  %v38_v6 = vld [vmem:[#allocation2 + $0x60] sm:$0xff]  ;;  %vm64_vm1 = vcmask 64512   ;;  %s3361_s26 = smov 64   ;;  %s3362_s27 = smov 32  }
  0x15   :  { %v3394_v5 = vpack.c.bf16 %v36_v3, %v35_v2  ;;  %v26_v7 = vld [vmem:[#allocation2] sm:$0xff]  ;;  %v3400_v9 = vpack.c.bf16 %v38_v6, %v37_v4  ;;  %v53_v10 = vld [vmem:[%s3795_s0 + $0x8] sm:$0xff]  ;;  %v28_v12 = vld [vmem:[#allocation2 + $0x10] sm:$0xff]  ;;  %v3429_v18 = vshrl.u32 %v48_v17, 7  ;;  %vm194_vm2 = vcmask 261120  }
  0x16   :  { %v52_v8 = vld [vmem:[%s3795_s0] sm:$0xff]  ;;  %2713 = vmatprep.subr.mxu0 %v26_v7  ;;  %v27_v11 = vld [vmem:[#allocation2 + $0x8] sm:$0xff]  ;;  %v29_v14 = vld [vmem:[#allocation2 + $0x18] sm:$0xff] }
  0x17   :  { %3015 = vmatpush3.bf16.msra.mxu1 %v3394_v5  ;;  %2714 = vmatpush3.msra.mxu0 %v26_v7  ;;  %v3410_v13 = vpack.c.bf16 %v28_v12, %v27_v11  ;;  %v30_v15 = vld [vmem:[#allocation2 + $0x20] sm:$0xff]  ;;  %v62_v20 = vsub.s32 0, %v3429_v18  ;;  %v3434_v22 = vld [vmem:[#allocation2 + $0x68] sm:$0xff]  ;;  %v32_v41 = vld [vmem:[#allocation2 + $0x30] sm:$0xff]  ;;  %v50_v62 = vsub.s32 1, %v3429_v18 }
  0x18   :  { %3016 = vmatprep.subr.bf16.mxu1 %v3358_v0  ;;  %2715 = vmatprep.mubr.msk.f32.mxu0 %vm64_vm1, %v52_v8  ;;  %v3415_v16 = vpack.c.bf16 %v30_v15, %v29_v14  ;;  %v31_v40 = vld [vmem:[#allocation2 + $0x28] sm:$0xff]  ;;  %v54_v42 = vld [vmem:[%s3795_s0 + $0x10] sm:$0xff]  ;;  %v55_v44 = vld [vmem:[%s3795_s0 + $0x18] sm:$0xff] }
  0x19   :  { %3025 = vmatprep.subr.bf16.mxu0 %v3358_v0  ;;  %2716 = vmatmul.mubr.msk.f32.vlgmr.msra.gmra.mrb[0].mxu0 %vm64_vm1, %v53_v10  ;;  %v3439_v25 = vrot.slane %v3434_v22, %v62_v20  ;;  %v3450_v43 = vpack.c.bf16 %v32_v41, %v31_v40  ;;  %v56_v45 = vld [vmem:[%s3795_s0 + $0x20] sm:$0xff]  ;;  %v33_v46 = vld [vmem:[#allocation2 + $0x38] sm:$0xff]  ;;  %v57_v48 = vld [vmem:[%s3795_s0 + $0x28] sm:$0xff]  ;;  %v3511_v63 = vrot.slane %v3434_v22, %v50_v62 }
  0x1a   :  { %2718 = vmatprep.mubr.msk.f32.mxu0 %vm64_vm1, %v54_v42  ;;  %v34_v47 = vld [vmem:[#allocation2 + $0x40] sm:$0xff]  ;;  %v58_v50 = vld [vmem:[%s3795_s0 + $0x30] sm:$0xff]  ;;  %v59_v51 = vld [vmem:[%s3795_s0 + $0x38] sm:$0xff]  ;;  %s3363_s0 = smov [#allocation5]  }
  0x1b   :  { %3018 = vmatpush3.bf16.msra.mxu1 %v3400_v9  ;;  %3027 = vmatpush3.bf16.msra.mxu0 %v3450_v43  ;;  %v3465_v49 = vpack.c.bf16 %v34_v47, %v33_v46  ;;  %s2517_s12 = sshll.u32 %s3363_s0, 4  ;;  %s2518_s12 = int_to_ptr.vmem [resolvable:$true] %s2517_s12 }
  0x1c   :  { %3019 = vmatprep.subr.bf16.mxu1 %v3358_v0  ;;  %3028 = vmatprep.subr.bf16.mxu0 %v3358_v0  ;;  %s3329_s13 = scalar_lea.vmem %s2518_s12, 128  ;;  %p3334_p9 = scmp.lt.s32.totalorder %s2518_s12, %s2518_s12 }
  0x1d   :  { %2719 = vmatmul.mubr.msk.f32.gmra.mrb[2].mxu0 %vm64_vm1, %v55_v44  ;;  %p3330_p8 = scmp.ne.s32.totalorder %s2518_s12, %s3329_s13  ;;  %p3335_p10 = scmp.lt.s32.totalorder %s3329_s13, %s3329_s13 }
  0x1e   :  { %2736 = vmatmul.mubr.f32.vlgmr.msra.gmra.mrb[0].mxu1 %v3360_v1  ;;  %2721 = vmatprep.mubr.msk.f32.mxu0 %vm64_vm1, %v56_v45 }
  0x1f   :  { %3021 = vmatpush3.bf16.msra.mxu1 %v3410_v13  ;;  %2746 = vmatprep.mubr.msk.f32.mxu1 %vm3359_vm0, %v3360_v1  ;;  %p3336_p11 = por %p3335_p10, %p3334_p9 }
  0x20   :  { %3022 = vmatprep.subr.bf16.mxu1 %v3358_v0  ;;  %3030 = vmatpush3.bf16.msra.mxu0 %v3465_v49 }
  0x21   :  { %2722 = vmatmul.mubr.msk.f32.gmra.mrb[4].mxu0 %vm64_vm1, %v57_v48  ;;  %3037 = vmatprep.subr.bf16.mxu0 %v3358_v0  ;;  %p3337_p12 = pnand %p3336_p11, %p3330_p8 }
  0x22   :  { %2724 = vmatprep.mubr.msk.f32.mxu0 %vm64_vm1, %v58_v50 }
  0x23   :  { %3024 = vmatpush3.bf16.msra.mxu1 %v3415_v16 }
  0x24   :  { %3031 = vmatprep.subr.bf16.mxu1 %v3358_v0 }
  0x25   :  { %2725 = vmatmul.mubr.msk.f32.gmra.mrb[6].mxu0 %vm64_vm1, %v59_v51 }
  0x26   :  { %2747 = vmatmul.mubr.f32.vlgmr.msra.gmra.mrb[2].mxu1 %v3360_v1  ;;  %2757 = vmatprep.mubr.msk.f32.mxu0 %vm3359_vm0, %v3360_v1 }
  0x27   :  { %3033 = vmatpush3.bf16.msra.mxu1 %v3394_v5  ;;  %2768 = vmatprep.mubr.msk.f32.mxu1 %vm3359_vm0, %v3360_v1 }
  0x28   :  { %3034 = vmatprep.subr.bf16.mxu1 %v3358_v0 }
  0x2b   :  { %3036 = vmatpush3.bf16.msra.mxu1 %v3400_v9 }
  0x2c   :  { %3043 = vmatprep.subr.bf16.mxu1 %v3358_v0 }
  0xec   :  { %v3431_v19 = vpop.f32.mrb[0].mxu0 }
  0xed   :  { %v155_v21 = vpop.f32.mrb[1].mxu0  ;;  %v161_v7 = vadd.f32 %v3431_v19, %v3439_v25 }
  0xee   :  { %v156_v26 = vadd.f32 %v155_v21, %v3439_v25 }
  0xf0   :  { %v3483_v55 = vpop.f32.mrb[2].mxu0 }
  0xf1   :  { %v3436_v23 = vpop.f32.mrb[0].mxu1  ;;  %v3485_v56 = vpop.f32.mrb[3].mxu0 }
  0xf2   :  { %v2737_v24 = vpop.f32.mrb[1].mxu1 }
  0xf4   :  { %v3487_v57 = vpop.f32.mrb[4].mxu0 }
  0xf5   :  { %v3489_v58 = vpop.f32.mrb[5].mxu0 }
  0xf8   :  { %v3491_v59 = vpop.f32.mrb[6].mxu0 }
  0xf9   :  { %v334_v27 = vpop.f32.mrb[2].mxu1  ;;  %v3493_v60 = vpop.f32.mrb[7].mxu0 }
  0xfa   :  { %v338_v28 = vadd.f32 %v334_v27, %v156_v26  ;;  %v2748_v29 = vpop.f32.mrb[3].mxu1 }
  0xfc   :  { %3178 = vtanh.f32 %v338_v28  ;;  %v2534_v31 = vmul.f32 -1.442695, %v338_v28 }
  0xfe   :  { %3180 = vpow2.f32 %v2534_v31 }
 0x106   :  { %v3179_v30 = vpop.eup %3178 }
 0x107   :  { %348 = vrot.lane.b32.xlu0 %v3179_v30, %s3361_s26 }
 0x108   :  { %v3181_v32 = vpop.eup %3180 }
 0x109   :  { %v342_v33 = vadd.f32 1.0, %v3181_v32 }
 0x10b   :  { %3182 = vrcp.f32 %v342_v33 }
 0x115   :  { %v3183_v34 = vpop.eup %3182 }
 0x116   :  { %v346_v37 = vmul.f32 0.0, %v3183_v34 }
 0x179   :  { %v349_v35 = vpop.permute.xlu0 %348 }
 0x17a   :  { %v351_v36 = vmul.f32 %v3183_v34, %v349_v35 }
 0x17c   :  { %353 = vrot.lane.b32.xlu0 %v351_v36, %s3362_s27 }
 0x1ee   :  { %v354_v38 = vpop.permute.xlu0 %353 }
 0x1ef   :  { %v3444_v39 = vadd.f32 %v354_v38, %v346_v37 }
 0x1f1   :  { %3184 = vtanh.f32 %v3444_v39 }
 0x1fb   :  { %v3185_v52 = vpop.eup %3184 }
 0x1fc   :  { %359 = vrot.lane.b32.xlu1 %v3185_v52, %s3361_s26  ;;  %v166_v52 = vadd.f32 %v3485_v56, %v3439_v25 }
 0x26e   :  { %v360_v53 = vpop.permute.xlu1 %359 }
 0x26f   :  { %v362_v54 = vmul.f32 %v3183_v34, %v360_v53 }
 0x271   :  { %364 = vrot.lane.b32.xlu1 %v362_v54, %s3362_s27 }
 0x2e3   :  { %v365_v61 = vpop.permute.xlu1 %364 }
 0x2e4   :  { %2758 = vmatmul.mubr.msk.f32.vlgmr.msra.gmra.mrb[8].mxu0 %vm194_vm2, %v365_v61 }
 0x2e5   :  { %3039 = vmatpush3.bf16.msra.mxu0 %v3410_v13  ;;  %2779 = vmatprep.mubr.msk.f32.mxu0 %vm3359_vm0, %v3360_v1 }
 0x2e6   :  { %3040 = vmatprep.subr.bf16.mxu0 %v3358_v0 }
 0x2e9   :  { %3042 = vmatpush3.bf16.msra.mxu0 %v3415_v16 }
 0x2ea   :  { %3049 = vmatprep.subr.bf16.mxu0 %v3358_v0 }
 0x2ec   :  { %2780 = vmatmul.mubr.msk.f32.vlgmr.msra.gmra.mrb[10].mxu0 %vm194_vm2, %v365_v61 }
 0x2ed   :  { %3051 = vmatpush3.bf16.msra.mxu0 %v3394_v5  ;;  %2801 = vmatprep.mubr.msk.f32.mxu0 %vm3359_vm0, %v3360_v1 }
 0x2ee   :  { %3052 = vmatprep.subr.bf16.mxu0 %v3358_v0 }
 0x2f1   :  { %3054 = vmatpush3.bf16.msra.mxu0 %v3400_v9 }
 0x2f2   :  { %3061 = vmatprep.subr.bf16.mxu0 %v3358_v0 }
 0x3b7   :  { %v434_v2 = vpop.f32.mrb[8].mxu0 }
 0x3b8   :  { %v435_v3 = vadd.f32 %v434_v2, %v3436_v23  ;;  %v2759_v4 = vpop.f32.mrb[9].mxu0 }
 0x3ba   :  { %v438_v6 = vadd.f32 %v435_v3, %v3511_v63 }
 0x3bc   :  { %3186 = vtanh.f32 %v438_v6  ;;  %v2536_v15 = vmul.f32 -1.442695, %v438_v6 }
 0x3bf   :  { %v604_v8 = vpop.f32.mrb[10].mxu0 }
 0x3c0   :  { %v608_v10 = vadd.f32 %v604_v8, %v161_v7  ;;  %v2781_v11 = vpop.f32.mrb[11].mxu0 }
 0x3c2   :  { %3188 = vtanh.f32 %v608_v10  ;;  %v2539_v17 = vmul.f32 -1.442695, %v608_v10 }
 0x3c3   :  { %3190 = vpow2.f32 %v2536_v15 }
 0x3c4   :  { %3192 = vpow2.f32 %v2539_v17 }
 0x3c6   :  { %v3187_v12 = vpop.eup %3186 }
 0x3c7   :  { %448 = vrot.lane.b32.xlu0 %v3187_v12, %s3361_s26 }
 0x3cc   :  { %v3189_v14 = vpop.eup %3188 }
 0x3cd   :  { %618 = vrot.lane.b32.xlu1 %v3189_v14, %s3361_s26  ;;  %v3191_v20 = vpop.eup %3190 }
 0x3ce   :  { %v442_v21 = vadd.f32 1.0, %v3191_v20  ;;  %v3193_v22 = vpop.eup %3192 }
 0x3cf   :  { %v612_v23 = vadd.f32 1.0, %v3193_v22 }
 0x3d0   :  { %3194 = vrcp.f32 %v442_v21 }
 0x3d1   :  { %3196 = vrcp.f32 %v612_v23 }
 0x3da   :  { %v3195_v19 = vpop.eup %3194 }
 0x3db   :  { %v3197_v27 = vpop.eup %3196  ;;  %v446_v30 = vmul.f32 0.0, %v3195_v19 }
 0x3dc   :  { %v616_v33 = vmul.f32 %v3197_v27, %v3444_v39 }
 0x439   :  { %v449_v24 = vpop.permute.xlu0 %448 }
 0x43a   :  { %v451_v26 = vmul.f32 %v3195_v19, %v449_v24 }
 0x43c   :  { %453 = vrot.lane.b32.xlu0 %v451_v26, %s3362_s27 }
 0x43f   :  { %v619_v28 = vpop.permute.xlu1 %618 }
 0x440   :  { %v621_v29 = vmul.f32 %v3197_v27, %v619_v28 }
 0x442   :  { %623 = vrot.lane.b32.xlu1 %v621_v29, %s3362_s27 }
 0x4ae   :  { %v454_v31 = vpop.permute.xlu0 %453 }
 0x4af   :  { %v3521_v32 = vadd.f32 %v454_v31, %v446_v30 }
 0x4b1   :  { %3198 = vtanh.f32 %v3521_v32 }
 0x4b4   :  { %v624_v34 = vpop.permute.xlu1 %623 }
 0x4b5   :  { %v3525_v35 = vadd.f32 %v624_v34, %v616_v33 }
 0x4b7   :  { %3200 = vtanh.f32 %v3525_v35 }
 0x4bb   :  { %v3199_v36 = vpop.eup %3198 }
 0x4bc   :  { %459 = vrot.lane.b32.xlu0 %v3199_v36, %s3361_s26 }
 0x4c1   :  { %v3201_v37 = vpop.eup %3200 }
 0x4c2   :  { %629 = vrot.lane.b32.xlu1 %v3201_v37, %s3361_s26 }
 0x52e   :  { %v460_v38 = vpop.permute.xlu0 %459 }
 0x52f   :  { %v462_v40 = vmul.f32 %v3195_v19, %v460_v38 }
 0x531   :  { %464 = vrot.lane.b32.xlu0 %v462_v40, %s3362_s27 }
 0x534   :  { %v630_v41 = vpop.permute.xlu1 %629 }
 0x535   :  { %v632_v42 = vmul.f32 %v3197_v27, %v630_v41  ;;  %v171_v41 = vadd.f32 %v3483_v55, %v3439_v25 }
 0x537   :  { %634 = vrot.lane.b32.xlu1 %v632_v42, %s3362_s27 }
 0x5a3   :  { %v465_v39 = vpop.permute.xlu0 %464 }
 0x5a4   :  { %2769 = vmatmul.mubr.msk.f32.vlgmr.msra.gmra.mrb[4].mxu1 %vm194_vm2, %v465_v39 }
 0x5a5   :  { %3045 = vmatpush3.bf16.msra.mxu1 %v3450_v43  ;;  %2790 = vmatprep.mubr.msk.f32.mxu1 %vm3359_vm0, %v3360_v1 }
 0x5a6   :  { %3046 = vmatprep.subr.bf16.mxu1 %v3358_v0 }
 0x5a9   :  { %3048 = vmatpush3.bf16.msra.mxu1 %v3465_v49  ;;  %v635_v44 = vpop.permute.xlu1 %634 }
 0x5aa   :  { %3055 = vmatprep.subr.bf16.mxu1 %v3358_v0 }
 0x5ac   :  { %2791 = vmatmul.mubr.msk.f32.vlgmr.msra.gmra.mrb[6].mxu1 %vm194_vm2, %v635_v44 }
 0x5ad   :  { %3057 = vmatpush3.bf16.msra.mxu1 %v3410_v13  ;;  %2812 = vmatprep.mubr.msk.f32.mxu1 %vm3359_vm0, %v3360_v1 }
 0x5ae   :  { %3058 = vmatprep.subr.bf16.mxu1 %v3358_v0 }
 0x5b1   :  { %3060 = vmatpush3.bf16.msra.mxu1 %v3415_v16 }
 0x5b2   :  { %3067 = vmatprep.subr.bf16.mxu1 %v3358_v0 }
 0x5b4   :  { %2813 = vmatmul.mubr.msk.f32.vlgmr.msra.gmra.mrb[8].mxu1 %vm194_vm2, %v635_v44 }
 0x5b5   :  { %3069 = vmatpush3.bf16.msra.mxu1 %v3394_v5  ;;  %2834 = vmatprep.mubr.msk.f32.mxu1 %vm3359_vm0, %v3360_v1 }
 0x5b6   :  { %3070 = vmatprep.subr.bf16.mxu1 %v3358_v0 }
 0x5b9   :  { %3072 = vmatpush3.bf16.msra.mxu1 %v3400_v9 }
 0x5ba   :  { %3079 = vmatprep.subr.bf16.mxu1 %v3358_v0 }
 0x677   :  { %v534_v45 = vpop.f32.mrb[4].mxu1 }
 0x678   :  { %v2770_v46 = vpop.f32.mrb[5].mxu1 }
 0x67f   :  { %v704_v47 = vpop.f32.mrb[6].mxu1 }
 0x680   :  { %v705_v48 = vadd.f32 %v704_v47, %v534_v45  ;;  %v2792_v50 = vpop.f32.mrb[7].mxu1 }
 0x682   :  { %v708_v51 = vadd.f32 %v705_v48, %v3511_v63 }
 0x684   :  { %3202 = vtanh.f32 %v708_v51  ;;  %v2541_v3 = vmul.f32 -1.442695, %v708_v51 }
 0x687   :  { %v874_v53 = vpop.f32.mrb[8].mxu1 }
 0x688   :  { %v878_v54 = vadd.f32 %v874_v53, %v166_v52  ;;  %v2814_v61 = vpop.f32.mrb[9].mxu1 }
 0x68a   :  { %3204 = vtanh.f32 %v878_v54  ;;  %v2544_v4 = vmul.f32 -1.442695, %v878_v54 }
 0x68b   :  { %3206 = vpow2.f32 %v2541_v3 }
 0x68c   :  { %3208 = vpow2.f32 %v2544_v4 }
 0x68e   :  { %v3203_v62 = vpop.eup %3202 }
 0x68f   :  { %718 = vrot.lane.b32.xlu0 %v3203_v62, %s3361_s26 }
 0x694   :  { %v3205_v2 = vpop.eup %3204 }
 0x695   :  { %888 = vrot.lane.b32.xlu1 %v3205_v2, %s3361_s26  ;;  %v3207_v6 = vpop.eup %3206 }
 0x696   :  { %v712_v7 = vadd.f32 1.0, %v3207_v6  ;;  %v3209_v8 = vpop.eup %3208 }
 0x697   :  { %v882_v10 = vadd.f32 1.0, %v3209_v8 }
 0x698   :  { %3210 = vrcp.f32 %v712_v7 }
 0x699   :  { %3212 = vrcp.f32 %v882_v10 }
 0x6a2   :  { %v3211_v56 = vpop.eup %3210 }
 0x6a3   :  { %v3213_v14 = vpop.eup %3212  ;;  %v716_v20 = vmul.f32 %v3211_v56, %v3521_v32 }
 0x6a4   :  { %v886_v23 = vmul.f32 %v3213_v14, %v3525_v35 }
 0x701   :  { %v719_v11 = vpop.permute.xlu0 %718 }
 0x702   :  { %v721_v12 = vmul.f32 %v3211_v56, %v719_v11 }
 0x704   :  { %723 = vrot.lane.b32.xlu0 %v721_v12, %s3362_s27 }
 0x707   :  { %v889_v15 = vpop.permute.xlu1 %888 }
 0x708   :  { %v891_v17 = vmul.f32 %v3213_v14, %v889_v15 }
 0x70a   :  { %893 = vrot.lane.b32.xlu1 %v891_v17, %s3362_s27 }
 0x776   :  { %v724_v21 = vpop.permute.xlu0 %723 }
 0x777   :  { %v3561_v22 = vadd.f32 %v724_v21, %v716_v20 }
 0x779   :  { %3214 = vtanh.f32 %v3561_v22 }
 0x77c   :  { %v894_v19 = vpop.permute.xlu1 %893 }
 0x77d   :  { %v3565_v24 = vadd.f32 %v894_v19, %v886_v23 }
 0x77f   :  { %3216 = vtanh.f32 %v3565_v24 }
 0x783   :  { %v3215_v26 = vpop.eup %3214 }
 0x784   :  { %729 = vrot.lane.b32.xlu0 %v3215_v26, %s3361_s26 }
 0x789   :  { %v3217_v27 = vpop.eup %3216 }
 0x78a   :  { %899 = vrot.lane.b32.xlu1 %v3217_v27, %s3361_s26 }
 0x7f6   :  { %v730_v28 = vpop.permute.xlu0 %729 }
 0x7f7   :  { %v732_v29 = vmul.f32 %v3211_v56, %v730_v28 }
 0x7f9   :  { %734 = vrot.lane.b32.xlu0 %v732_v29, %s3362_s27  ;;  %v176_v29 = vadd.f32 %v3489_v58, %v3439_v25 }
 0x7fc   :  { %v900_v30 = vpop.permute.xlu1 %899 }
 0x7fd   :  { %v902_v31 = vmul.f32 %v3213_v14, %v900_v30 }
 0x7ff   :  { %904 = vrot.lane.b32.xlu1 %v902_v31, %s3362_s27 }
 0x86b   :  { %v735_v32 = vpop.permute.xlu0 %734 }
 0x86c   :  { %2802 = vmatmul.mubr.msk.f32.vlgmr.msra.gmra.mrb[12].mxu0 %vm194_vm2, %v735_v32 }
 0x86d   :  { %3063 = vmatpush3.bf16.msra.mxu0 %v3450_v43  ;;  %2823 = vmatprep.mubr.msk.f32.mxu0 %vm3359_vm0, %v3360_v1 }
 0x86e   :  { %3064 = vmatprep.subr.bf16.mxu0 %v3358_v0 }
 0x871   :  { %3066 = vmatpush3.bf16.msra.mxu0 %v3465_v49  ;;  %v905_v33 = vpop.permute.xlu1 %904 }
 0x872   :  { %3073 = vmatprep.subr.bf16.mxu0 %v3358_v0 }
 0x874   :  { %2824 = vmatmul.mubr.msk.f32.vlgmr.msra.gmra.mrb[14].mxu0 %vm194_vm2, %v905_v33 }
 0x875   :  { %3075 = vmatpush3.bf16.msra.mxu0 %v3410_v13  ;;  %2845 = vmatprep.mubr.msk.f32.mxu0 %vm3359_vm0, %v3360_v1 }
 0x876   :  { %3076 = vmatprep.subr.bf16.mxu0 %v3358_v0 }
 0x879   :  { %3078 = vmatpush3.bf16.msra.mxu0 %v3415_v16 }
 0x87a   :  { %3085 = vmatprep.subr.bf16.mxu0 %v3358_v0 }
 0x87c   :  { %2846 = vmatmul.mubr.msk.f32.vlgmr.msra.gmra.mrb[16].mxu0 %vm194_vm2, %v905_v33 }
 0x87d   :  { %3087 = vmatpush3.bf16.msra.mxu0 %v3394_v5  ;;  %2867 = vmatprep.mubr.msk.f32.mxu0 %vm3359_vm0, %v3360_v1 }
 0x87e   :  { %3088 = vmatprep.subr.bf16.mxu0 %v3358_v0 }
 0x881   :  { %3090 = vmatpush3.bf16.msra.mxu0 %v3400_v9 }
 0x882   :  { %3097 = vmatprep.subr.bf16.mxu0 %v3358_v0 }
 0x93f   :  { %v804_v34 = vpop.f32.mrb[12].mxu0 }
 0x940   :  { %v2803_v35 = vpop.f32.mrb[13].mxu0 }
 0x947   :  { %v974_v36 = vpop.f32.mrb[14].mxu0 }
 0x948   :  { %v975_v37 = vadd.f32 %v974_v36, %v804_v34  ;;  %v2825_v38 = vpop.f32.mrb[15].mxu0 }
 0x94a   :  { %v978_v40 = vadd.f32 %v975_v37, %v3511_v63 }
 0x94c   :  { %3218 = vtanh.f32 %v978_v40  ;;  %v2546_v47 = vmul.f32 -1.442695, %v978_v40 }
 0x94f   :  { %v1144_v42 = vpop.f32.mrb[16].mxu0 }
 0x950   :  { %v1148_v39 = vadd.f32 %v1144_v42, %v171_v41  ;;  %v2847_v44 = vpop.f32.mrb[17].mxu0 }
 0x952   :  { %3220 = vtanh.f32 %v1148_v39  ;;  %v2549_v48 = vmul.f32 -1.442695, %v1148_v39 }
 0x953   :  { %3222 = vpow2.f32 %v2546_v47 }
 0x954   :  { %3224 = vpow2.f32 %v2549_v48 }
 0x956   :  { %v3219_v45 = vpop.eup %3218 }
 0x957   :  { %988 = vrot.lane.b32.xlu0 %v3219_v45, %s3361_s26 }
 0x95c   :  { %v3221_v46 = vpop.eup %3220 }
 0x95d   :  { %1158 = vrot.lane.b32.xlu1 %v3221_v46, %s3361_s26  ;;  %v3223_v50 = vpop.eup %3222 }
 0x95e   :  { %v982_v51 = vadd.f32 1.0, %v3223_v50  ;;  %v3225_v52 = vpop.eup %3224 }
 0x95f   :  { %v1152_v53 = vadd.f32 1.0, %v3225_v52 }
 0x960   :  { %3226 = vrcp.f32 %v982_v51 }
 0x961   :  { %3228 = vrcp.f32 %v1152_v53 }
 0x96a   :  { %v3227_v55 = vpop.eup %3226 }
 0x96b   :  { %v3229_v62 = vpop.eup %3228  ;;  %v986_v4 = vmul.f32 %v3227_v55, %v3561_v22 }
 0x96c   :  { %v1156_v8 = vmul.f32 %v3229_v62, %v3565_v24 }
 0x9c9   :  { %v989_v54 = vpop.permute.xlu0 %988 }
 0x9ca   :  { %v991_v61 = vmul.f32 %v3227_v55, %v989_v54 }
 0x9cc   :  { %993 = vrot.lane.b32.xlu0 %v991_v61, %s3362_s27 }
 0x9cf   :  { %v1159_v2 = vpop.permute.xlu1 %1158 }
 0x9d0   :  { %v1161_v3 = vmul.f32 %v3229_v62, %v1159_v2 }
 0x9d2   :  { %1163 = vrot.lane.b32.xlu1 %v1161_v3, %s3362_s27 }
 0xa3e   :  { %v994_v6 = vpop.permute.xlu0 %993 }
 0xa3f   :  { %v3601_v7 = vadd.f32 %v994_v6, %v986_v4 }
 0xa41   :  { %3230 = vtanh.f32 %v3601_v7 }
 0xa44   :  { %v1164_v10 = vpop.permute.xlu1 %1163 }
 0xa45   :  { %v3605_v56 = vadd.f32 %v1164_v10, %v1156_v8 }
 0xa47   :  { %3232 = vtanh.f32 %v3605_v56 }
 0xa4b   :  { %v3231_v11 = vpop.eup %3230 }
 0xa4c   :  { %999 = vrot.lane.b32.xlu0 %v3231_v11, %s3361_s26 }
 0xa51   :  { %v3233_v12 = vpop.eup %3232 }
 0xa52   :  { %1169 = vrot.lane.b32.xlu1 %v3233_v12, %s3361_s26 }
 0xabe   :  { %v1000_v14 = vpop.permute.xlu0 %999 }
 0xabf   :  { %v1002_v15 = vmul.f32 %v3227_v55, %v1000_v14  ;;  %v181_v14 = vadd.f32 %v3487_v57, %v3439_v25 }
 0xac1   :  { %1004 = vrot.lane.b32.xlu0 %v1002_v15, %s3362_s27 }
 0xac4   :  { %v1170_v17 = vpop.permute.xlu1 %1169 }
 0xac5   :  { %v1172_v20 = vmul.f32 %v3229_v62, %v1170_v17 }
 0xac7   :  { %1174 = vrot.lane.b32.xlu1 %v1172_v20, %s3362_s27 }
 0xb33   :  { %v1005_v21 = vpop.permute.xlu0 %1004 }
 0xb34   :  { %2835 = vmatmul.mubr.msk.f32.vlgmr.msra.gmra.mrb[10].mxu1 %vm194_vm2, %v1005_v21 }
 0xb35   :  { %3081 = vmatpush3.bf16.msra.mxu1 %v3450_v43  ;;  %2856 = vmatprep.mubr.msk.f32.mxu1 %vm3359_vm0, %v3360_v1 }
 0xb36   :  { %3082 = vmatprep.subr.bf16.mxu1 %v3358_v0 }
 0xb39   :  { %3084 = vmatpush3.bf16.msra.mxu1 %v3465_v49  ;;  %v1175_v22 = vpop.permute.xlu1 %1174 }
 0xb3a   :  { %3091 = vmatprep.subr.bf16.mxu1 %v3358_v0 }
 0xb3c   :  { %2857 = vmatmul.mubr.msk.f32.vlgmr.msra.gmra.mrb[12].mxu1 %vm194_vm2, %v1175_v22 }
 0xb3d   :  { %3093 = vmatpush3.bf16.msra.mxu1 %v3410_v13  ;;  %2878 = vmatprep.mubr.msk.f32.mxu1 %vm3359_vm0, %v3360_v1 }
 0xb3e   :  { %3094 = vmatprep.subr.bf16.mxu1 %v3358_v0 }
 0xb41   :  { %3096 = vmatpush3.bf16.msra.mxu1 %v3415_v16 }
 0xb42   :  { %3103 = vmatprep.subr.bf16.mxu1 %v3358_v0 }
 0xb44   :  { %2879 = vmatmul.mubr.msk.f32.vlgmr.msra.gmra.mrb[14].mxu1 %vm194_vm2, %v1175_v22 }
 0xb45   :  { %3105 = vmatpush3.bf16.msra.mxu1 %v3394_v5  ;;  %2900 = vmatprep.mubr.msk.f32.mxu1 %vm3359_vm0, %v3360_v1 }
 0xb46   :  { %3106 = vmatprep.subr.bf16.mxu1 %v3358_v0 }
 0xb49   :  { %3108 = vmatpush3.bf16.msra.mxu1 %v3400_v9 }
 0xb4a   :  { %3115 = vmatprep.subr.bf16.mxu1 %v3358_v0 }
 0xc07   :  { %v1074_v23 = vpop.f32.mrb[10].mxu1 }
 0xc08   :  { %v2836_v19 = vpop.f32.mrb[11].mxu1 }
 0xc0f   :  { %v1244_v24 = vpop.f32.mrb[12].mxu1 }
 0xc10   :  { %v1245_v26 = vadd.f32 %v1244_v24, %v1074_v23  ;;  %v2858_v27 = vpop.f32.mrb[13].mxu1 }
 0xc12   :  { %v1248_v28 = vadd.f32 %v1245_v26, %v3511_v63 }
 0xc14   :  { %3234 = vtanh.f32 %v1248_v28  ;;  %v2551_v35 = vmul.f32 -1.442695, %v1248_v28 }
 0xc17   :  { %v1414_v30 = vpop.f32.mrb[14].mxu1 }
 0xc18   :  { %v1418_v31 = vadd.f32 %v1414_v30, %v176_v29  ;;  %v2880_v32 = vpop.f32.mrb[15].mxu1 }
 0xc1a   :  { %3236 = vtanh.f32 %v1418_v31  ;;  %v2554_v36 = vmul.f32 -1.442695, %v1418_v31 }
 0xc1b   :  { %3238 = vpow2.f32 %v2551_v35 }
 0xc1c   :  { %3240 = vpow2.f32 %v2554_v36 }
 0xc1e   :  { %v3235_v33 = vpop.eup %3234 }
 0xc1f   :  { %1258 = vrot.lane.b32.xlu0 %v3235_v33, %s3361_s26 }
 0xc24   :  { %v3237_v34 = vpop.eup %3236 }
 0xc25   :  { %1428 = vrot.lane.b32.xlu1 %v3237_v34, %s3361_s26  ;;  %v3239_v37 = vpop.eup %3238 }
 0xc26   :  { %v1252_v38 = vadd.f32 1.0, %v3239_v37  ;;  %v3241_v40 = vpop.eup %3240 }
 0xc27   :  { %v1422_v41 = vadd.f32 1.0, %v3241_v40 }
 0xc28   :  { %3242 = vrcp.f32 %v1252_v38 }
 0xc29   :  { %3244 = vrcp.f32 %v1422_v41 }
 0xc32   :  { %v3243_v58 = vpop.eup %3242 }
 0xc33   :  { %v3245_v44 = vpop.eup %3244  ;;  %v1256_v47 = vmul.f32 %v3243_v58, %v3601_v7 }
 0xc34   :  { %v1426_v51 = vmul.f32 %v3245_v44, %v3605_v56 }
 0xc91   :  { %v1259_v42 = vpop.permute.xlu0 %1258 }
 0xc92   :  { %v1261_v39 = vmul.f32 %v3243_v58, %v1259_v42 }
 0xc94   :  { %1263 = vrot.lane.b32.xlu0 %v1261_v39, %s3362_s27 }
 0xc97   :  { %v1429_v45 = vpop.permute.xlu1 %1428 }
 0xc98   :  { %v1431_v46 = vmul.f32 %v3245_v44, %v1429_v45 }
 0xc9a   :  { %1433 = vrot.lane.b32.xlu1 %v1431_v46, %s3362_s27 }
 0xd06   :  { %v1264_v48 = vpop.permute.xlu0 %1263 }
 0xd07   :  { %v3641_v50 = vadd.f32 %v1264_v48, %v1256_v47 }
 0xd09   :  { %3246 = vtanh.f32 %v3641_v50 }
 0xd0c   :  { %v1434_v52 = vpop.permute.xlu1 %1433 }
 0xd0d   :  { %v3645_v53 = vadd.f32 %v1434_v52, %v1426_v51 }
 0xd0f   :  { %3248 = vtanh.f32 %v3645_v53 }
 0xd13   :  { %v3247_v55 = vpop.eup %3246 }
 0xd14   :  { %1269 = vrot.lane.b32.xlu0 %v3247_v55, %s3361_s26 }
 0xd19   :  { %v3249_v54 = vpop.eup %3248 }
 0xd1a   :  { %1439 = vrot.lane.b32.xlu1 %v3249_v54, %s3361_s26 }
 0xd86   :  { %v1270_v61 = vpop.permute.xlu0 %1269 }
 0xd87   :  { %v1272_v62 = vmul.f32 %v3243_v58, %v1270_v61 }
 0xd89   :  { %1274 = vrot.lane.b32.xlu0 %v1272_v62, %s3362_s27 }
 0xd8c   :  { %v1440_v2 = vpop.permute.xlu1 %1439 }
 0xd8d   :  { %v1442_v3 = vmul.f32 %v3245_v44, %v1440_v2 }
 0xd8f   :  { %1444 = vrot.lane.b32.xlu1 %v1442_v3, %s3362_s27 }
 0xdfb   :  { %v1275_v4 = vpop.permute.xlu0 %1274 }
 0xdfc   :  { %2868 = vmatmul.mubr.msk.f32.vlgmr.msra.gmra.mrb[18].mxu0 %vm194_vm2, %v1275_v4 }
 0xdfd   :  { %3099 = vmatpush3.bf16.msra.mxu0 %v3450_v43  ;;  %2889 = vmatprep.mubr.msk.f32.mxu0 %vm3359_vm0, %v3360_v1 }
 0xdfe   :  { %3100 = vmatprep.subr.bf16.mxu0 %v3358_v0 }
 0xe01   :  { %3102 = vmatpush3.bf16.msra.mxu0 %v3465_v49  ;;  %v1445_v6 = vpop.permute.xlu1 %1444 }
 0xe02   :  { %3109 = vmatprep.subr.bf16.mxu0 %v3358_v0 }
 0xe04   :  { %2890 = vmatmul.mubr.msk.f32.vlgmr.msra.gmra.mrb[20].mxu0 %vm194_vm2, %v1445_v6 }
 0xe05   :  { %3111 = vmatpush3.bf16.msra.mxu0 %v3410_v13  ;;  %2911 = vmatprep.mubr.msk.f32.mxu0 %vm3359_vm0, %v3360_v1 }
 0xe06   :  { %3112 = vmatprep.subr.bf16.mxu0 %v3358_v0 }
 0xe09   :  { %3114 = vmatpush3.bf16.msra.mxu0 %v3415_v16 }
 0xe0a   :  { %3121 = vmatprep.subr.bf16.mxu0 %v3358_v0 }
 0xe0c   :  { %2912 = vmatmul.mubr.msk.f32.vlgmr.msra.gmra.mrb[22].mxu0 %vm194_vm2, %v1445_v6 }
 0xe0d   :  { %3123 = vmatpush3.bf16.msra.mxu0 %v3394_v5  ;;  %2933 = vmatprep.mubr.msk.f32.mxu0 %vm3359_vm0, %v3360_v1 }
 0xe0e   :  { %3124 = vmatprep.subr.bf16.mxu0 %v3358_v0 }
 0xe11   :  { %3126 = vmatpush3.bf16.msra.mxu0 %v3400_v9 }
 0xe12   :  { %3133 = vmatprep.subr.bf16.mxu0 %v3358_v0 }
 0xecf   :  { %v1344_v7 = vpop.f32.mrb[18].mxu0 }
 0xed0   :  { %v2869_v8 = vpop.f32.mrb[19].mxu0 }
 0xed7   :  { %v1514_v10 = vpop.f32.mrb[20].mxu0 }
 0xed8   :  { %v1515_v56 = vadd.f32 %v1514_v10, %v1344_v7  ;;  %v2891_v11 = vpop.f32.mrb[21].mxu0 }
 0xeda   :  { %v1518_v12 = vadd.f32 %v1515_v56, %v3511_v63 }
 0xedc   :  { %3250 = vtanh.f32 %v1518_v12  ;;  %v2556_v23 = vmul.f32 -1.442695, %v1518_v12 }
 0xedf   :  { %v1684_v15 = vpop.f32.mrb[22].mxu0 }
 0xee0   :  { %v1688_v17 = vadd.f32 %v1684_v15, %v181_v14  ;;  %v2913_v20 = vpop.f32.mrb[23].mxu0 }
 0xee2   :  { %3252 = vtanh.f32 %v1688_v17  ;;  %v2559_v19 = vmul.f32 -1.442695, %v1688_v17 }
 0xee3   :  { %3254 = vpow2.f32 %v2556_v23 }
 0xee4   :  { %3256 = vpow2.f32 %v2559_v19 }
 0xee6   :  { %v3251_v21 = vpop.eup %3250 }
 0xee7   :  { %1528 = vrot.lane.b32.xlu0 %v3251_v21, %s3361_s26 }
 0xeec   :  { %v3253_v22 = vpop.eup %3252 }
 0xeed   :  { %1698 = vrot.lane.b32.xlu1 %v3253_v22, %s3361_s26  ;;  %v3255_v24 = vpop.eup %3254 }
 0xeee   :  { %v1522_v26 = vadd.f32 1.0, %v3255_v24  ;;  %v3257_v27 = vpop.eup %3256 }
 0xeef   :  { %v1692_v28 = vadd.f32 1.0, %v3257_v27 }
 0xef0   :  { %3258 = vrcp.f32 %v1522_v26 }
 0xef1   :  { %3260 = vrcp.f32 %v1692_v28 }
 0xefa   :  { %v3259_v57 = vpop.eup %3258 }
 0xefb   :  { %v3261_v31 = vpop.eup %3260  ;;  %v1526_v34 = vmul.f32 %v3259_v57, %v3641_v50 }
 0xefc   :  { %v1696_v37 = vmul.f32 %v3261_v31, %v3645_v53 }
 0xf59   :  { %v1529_v29 = vpop.permute.xlu0 %1528 }
 0xf5a   :  { %v1531_v30 = vmul.f32 %v3259_v57, %v1529_v29 }
 0xf5c   :  { %1533 = vrot.lane.b32.xlu0 %v1531_v30, %s3362_s27 }
 0xf5f   :  { %v1699_v32 = vpop.permute.xlu1 %1698 }
 0xf60   :  { %v1701_v33 = vmul.f32 %v3261_v31, %v1699_v32 }
 0xf62   :  { %1703 = vrot.lane.b32.xlu1 %v1701_v33, %s3362_s27 }
 0xfce   :  { %v1534_v35 = vpop.permute.xlu0 %1533 }
 0xfcf   :  { %v3681_v36 = vadd.f32 %v1534_v35, %v1526_v34 }
 0xfd1   :  { %3262 = vtanh.f32 %v3681_v36 }
 0xfd4   :  { %v1704_v38 = vpop.permute.xlu1 %1703 }
 0xfd5   :  { %v3685_v40 = vadd.f32 %v1704_v38, %v1696_v37  ;;  %v191_v37 = vadd.f32 %v3491_v59, %v3439_v25 }
 0xfd7   :  { %3264 = vtanh.f32 %v3685_v40 }
 0xfdb   :  { %v3263_v41 = vpop.eup %3262 }
 0xfdc   :  { %1539 = vrot.lane.b32.xlu0 %v3263_v41, %s3361_s26 }
 0xfe1   :  { %v3265_v58 = vpop.eup %3264 }
 0xfe2   :  { %1709 = vrot.lane.b32.xlu1 %v3265_v58, %s3361_s26 }
0x104e   :  { %v1540_v42 = vpop.permute.xlu0 %1539 }
0x104f   :  { %v1542_v39 = vmul.f32 %v3259_v57, %v1540_v42 }
0x1051   :  { %1544 = vrot.lane.b32.xlu0 %v1542_v39, %s3362_s27 }
0x1054   :  { %v1710_v44 = vpop.permute.xlu1 %1709 }
0x1055   :  { %v1712_v45 = vmul.f32 %v3261_v31, %v1710_v44 }
0x1057   :  { %1714 = vrot.lane.b32.xlu1 %v1712_v45, %s3362_s27 }
0x10c3   :  { %v1545_v46 = vpop.permute.xlu0 %1544 }
0x10c4   :  { %2901 = vmatmul.mubr.msk.f32.vlgmr.msra.gmra.mrb[16].mxu1 %vm194_vm2, %v1545_v46 }
0x10c5   :  { %3117 = vmatpush3.bf16.msra.mxu1 %v3450_v43  ;;  %2922 = vmatprep.mubr.msk.f32.mxu1 %vm3359_vm0, %v3360_v1 }
0x10c6   :  { %3118 = vmatprep.subr.bf16.mxu1 %v3358_v0 }
0x10c9   :  { %3120 = vmatpush3.bf16.msra.mxu1 %v3465_v49  ;;  %v1715_v47 = vpop.permute.xlu1 %1714 }
0x10ca   :  { %3127 = vmatprep.subr.bf16.mxu1 %v3358_v0 }
0x10cc   :  { %2923 = vmatmul.mubr.msk.f32.vlgmr.msra.gmra.mrb[18].mxu1 %vm194_vm2, %v1715_v47 }
0x10cd   :  { %3129 = vmatpush3.bf16.msra.mxu1 %v3410_v13  ;;  %2944 = vmatprep.mubr.msk.f32.mxu1 %vm3359_vm0, %v3360_v1 }
0x10ce   :  { %3130 = vmatprep.subr.bf16.mxu1 %v3358_v0 }
0x10d1   :  { %3132 = vmatpush3.bf16.msra.mxu1 %v3415_v16 }
0x10d2   :  { %3139 = vmatprep.subr.bf16.mxu1 %v3358_v0 }
0x10d4   :  { %2945 = vmatmul.mubr.msk.f32.vlgmr.msra.gmra.mrb[20].mxu1 %vm194_vm2, %v1715_v47 }
0x10d5   :  { %3141 = vmatpush3.bf16.msra.mxu1 %v3394_v5  ;;  %2966 = vmatprep.mubr.msk.f32.mxu1 %vm3359_vm0, %v3360_v1  ;;  %v186_v5 = vadd.f32 %v3493_v60, %v3439_v25 }
0x10d6   :  { %3142 = vmatprep.subr.bf16.mxu1 %v3358_v0 }
0x10d9   :  { %3144 = vmatpush3.bf16.msra.mxu1 %v3400_v9 }
0x10da   :  { %3151 = vmatprep.subr.bf16.mxu1 %v3358_v0 }
0x1197   :  { %v1614_v48 = vpop.f32.mrb[16].mxu1 }
0x1198   :  { %v2902_v50 = vpop.f32.mrb[17].mxu1 }
0x119f   :  { %v1784_v51 = vpop.f32.mrb[18].mxu1 }
0x11a0   :  { %v1785_v52 = vadd.f32 %v1784_v51, %v1614_v48  ;;  %v2924_v53 = vpop.f32.mrb[19].mxu1 }
0x11a2   :  { %v1788_v55 = vadd.f32 %v1785_v52, %v3511_v63 }
0x11a4   :  { %3266 = vtanh.f32 %v1788_v55  ;;  %v2561_v3 = vmul.f32 -1.442695, %v1788_v55 }
0x11a7   :  { %v1954_v54 = vpop.f32.mrb[20].mxu1 }
0x11a8   :  { %v1958_v61 = vadd.f32 %v1954_v54, %v186_v5  ;;  %v2946_v62 = vpop.f32.mrb[21].mxu1 }
0x11aa   :  { %3268 = vtanh.f32 %v1958_v61  ;;  %v2564_v4 = vmul.f32 -1.442695, %v1958_v61 }
0x11ab   :  { %3270 = vpow2.f32 %v2561_v3 }
0x11ac   :  { %3272 = vpow2.f32 %v2564_v4 }
0x11ae   :  { %v3267_v2 = vpop.eup %3266 }
0x11af   :  { %1798 = vrot.lane.b32.xlu0 %v3267_v2, %s3361_s26 }
0x11b4   :  { %v3269_v9 = vpop.eup %3268 }
0x11b5   :  { %1968 = vrot.lane.b32.xlu1 %v3269_v9, %s3361_s26  ;;  %v3271_v6 = vpop.eup %3270 }
0x11b6   :  { %v1792_v7 = vadd.f32 1.0, %v3271_v6  ;;  %v3273_v8 = vpop.eup %3272 }
0x11b7   :  { %v1962_v10 = vadd.f32 1.0, %v3273_v8 }
0x11b8   :  { %3274 = vrcp.f32 %v1792_v7 }
0x11b9   :  { %3276 = vrcp.f32 %v1962_v10 }
0x11c2   :  { %v3275_v60 = vpop.eup %3274 }
0x11c3   :  { %v3277_v12 = vpop.eup %3276  ;;  %v1796_v17 = vmul.f32 %v3275_v60, %v3681_v36 }
0x11c4   :  { %v1966_v22 = vmul.f32 %v3277_v12, %v3685_v40 }
0x1221   :  { %v1799_v56 = vpop.permute.xlu0 %1798 }
0x1222   :  { %v1801_v11 = vmul.f32 %v3275_v60, %v1799_v56 }
0x1224   :  { %1803 = vrot.lane.b32.xlu0 %v1801_v11, %s3362_s27 }
0x1227   :  { %v1969_v14 = vpop.permute.xlu1 %1968 }
0x1228   :  { %v1971_v15 = vmul.f32 %v3277_v12, %v1969_v14 }
0x122a   :  { %1973 = vrot.lane.b32.xlu1 %v1971_v15, %s3362_s27 }
0x1296   :  { %v1804_v20 = vpop.permute.xlu0 %1803 }
0x1297   :  { %v3721_v21 = vadd.f32 %v1804_v20, %v1796_v17 }
0x1299   :  { %3278 = vtanh.f32 %v3721_v21 }
0x129c   :  { %v1974_v23 = vpop.permute.xlu1 %1973 }
0x129d   :  { %v3725_v19 = vadd.f32 %v1974_v23, %v1966_v22 }
0x129f   :  { %3280 = vtanh.f32 %v3725_v19 }
0x12a3   :  { %v3279_v24 = vpop.eup %3278 }
0x12a4   :  { %1809 = vrot.lane.b32.xlu0 %v3279_v24, %s3361_s26 }
0x12a9   :  { %v3281_v26 = vpop.eup %3280 }
0x12aa   :  { %1979 = vrot.lane.b32.xlu1 %v3281_v26, %s3361_s26  ;;  %v40_v26 = vld [vmem:[#allocation2 + $0x70] sm:$0xff] }
0x1316   :  { %v1810_v27 = vpop.permute.xlu0 %1809 }
0x1317   :  { %v1812_v28 = vmul.f32 %v3275_v60, %v1810_v27  ;;  %v42_v27 = vld [vmem:[#allocation2 + $0x80] sm:$0xff] }
0x1319   :  { %1814 = vrot.lane.b32.xlu0 %v1812_v28, %s3362_s27 }
0x131c   :  { %v1980_v57 = vpop.permute.xlu1 %1979 }
0x131d   :  { %v1982_v29 = vmul.f32 %v3277_v12, %v1980_v57  ;;  %v43_v57 = vld [vmem:[#allocation2 + $0x88] sm:$0xff] }
0x131f   :  { %1984 = vrot.lane.b32.xlu1 %v1982_v29, %s3362_s27  ;;  %v3161_v29 = vpack.c.bf16 %v43_v57, %v42_v27 }
0x138b   :  { %v1815_v30 = vpop.permute.xlu0 %1814 }
0x138c   :  { %2934 = vmatmul.mubr.msk.f32.vlgmr.msra.gmra.mrb[24].mxu0 %vm194_vm2, %v1815_v30 }
0x138d   :  { %3135 = vmatpush3.bf16.msra.mxu0 %v3450_v43  ;;  %2955 = vmatprep.mubr.msk.f32.mxu0 %vm3359_vm0, %v3360_v1 }
0x138e   :  { %3136 = vmatprep.subr.bf16.mxu0 %v3358_v0 }
0x1391   :  { %3138 = vmatpush3.bf16.msra.mxu0 %v3465_v49  ;;  %v1985_v31 = vpop.permute.xlu1 %1984 }
0x1392   :  { %3145 = vmatprep.subr.bf16.mxu0 %v3358_v0 }
0x1394   :  { %2956 = vmatmul.mubr.msk.f32.vlgmr.msra.gmra.mrb[26].mxu0 %vm194_vm2, %v1985_v31 }
0x1395   :  { %3147 = vmatpush3.bf16.msra.mxu0 %v3410_v13  ;;  %2977 = vmatprep.mubr.msk.f32.mxu0 %vm3359_vm0, %v3360_v1 }
0x1396   :  { %3148 = vmatprep.subr.bf16.mxu0 %v3358_v0 }
0x1399   :  { %3150 = vmatpush3.bf16.msra.mxu0 %v3415_v16 }
0x139a   :  { %3157 = vmatprep.subr.bf16.mxu0 %v3358_v0 }
0x139c   :  { %2978 = vmatmul.mubr.msk.f32.vlgmr.msra.gmra.mrb[28].mxu0 %vm194_vm2, %v1985_v31  ;;  %v44_v31 = vld [vmem:[#allocation2 + $0x90] sm:$0xff] }
0x139d   :  { %2999 = vmatprep.mubr.msk.f32.mxu0 %vm3359_vm0, %v3360_v1 }
0x145f   :  { %v1884_v32 = vpop.f32.mrb[24].mxu0 }
0x1460   :  { %v2935_v33 = vpop.f32.mrb[25].mxu0 }
0x1467   :  { %v2054_v34 = vpop.f32.mrb[26].mxu0 }
0x1468   :  { %v2055_v35 = vadd.f32 %v2054_v34, %v1884_v32  ;;  %v2957_v36 = vpop.f32.mrb[27].mxu0  ;;  %v45_v32 = vld [vmem:[#allocation2 + $0x98] sm:$0xff] }
0x1469   :  { %v3164_v33 = vpack.c.bf16 %v45_v32, %v44_v31 }
0x146a   :  { %v2058_v13 = vadd.f32 %v2055_v35, %v3511_v63 }
0x146c   :  { %3282 = vtanh.f32 %v2058_v13  ;;  %v2566_v42 = vmul.f32 -1.442695, %v2058_v13  ;;  %v46_v13 = vld [vmem:[#allocation2 + $0xa0] sm:$0xff] }
0x146f   :  { %v2224_v38 = vpop.f32.mrb[28].mxu0 }
0x1470   :  { %v2228_v16 = vadd.f32 %v2224_v38, %v191_v37  ;;  %v2979_v40 = vpop.f32.mrb[29].mxu0  ;;  %v47_v37 = vld [vmem:[#allocation2 + $0xa8] sm:$0xff] }
0x1471   :  { %v3167_v38 = vpack.c.bf16 %v47_v37, %v46_v13  ;;  %v3306_v40 = vld [vmem:[#allocation2 + $0x68] sm:$0xff] }
0x1472   :  { %3284 = vtanh.f32 %v2228_v16  ;;  %v2569_v39 = vmul.f32 -1.442695, %v2228_v16  ;;  %v2355_v16 = vsub.s32 2, %v3429_v18 }
0x1473   :  { %3286 = vpow2.f32 %v2566_v42 }
0x1474   :  { %3288 = vpow2.f32 %v2569_v39 }
0x1476   :  { %v3283_v41 = vpop.eup %3282 }
0x1477   :  { %2068 = vrot.lane.b32.xlu0 %v3283_v41, %s3361_s26  ;;  %v2356_v41 = vrot.slane %v3306_v40, %v2355_v16 }
0x147c   :  { %v3285_v58 = vpop.eup %3284 }
0x147d   :  { %2238 = vrot.lane.b32.xlu1 %v3285_v58, %s3361_s26  ;;  %v3287_v44 = vpop.eup %3286 }
0x147e   :  { %v2062_v45 = vadd.f32 1.0, %v3287_v44  ;;  %v3289_v46 = vpop.eup %3288 }
0x147f   :  { %v2232_v47 = vadd.f32 1.0, %v3289_v46 }
0x1480   :  { %3290 = vrcp.f32 %v2062_v45 }
0x1481   :  { %3292 = vrcp.f32 %v2232_v47 }
0x148a   :  { %v3291_v25 = vpop.eup %3290 }
0x148b   :  { %v3293_v50 = vpop.eup %3292  ;;  %v2066_v53 = vmul.f32 %v3291_v25, %v3721_v21 }
0x148c   :  { %v2236_v54 = vmul.f32 %v3293_v50, %v3725_v19 }
0x14e9   :  { %v2069_v59 = vpop.permute.xlu0 %2068 }
0x14ea   :  { %v2071_v48 = vmul.f32 %v3291_v25, %v2069_v59 }
0x14ec   :  { %2073 = vrot.lane.b32.xlu0 %v2071_v48, %s3362_s27 }
0x14ef   :  { %v2239_v51 = vpop.permute.xlu1 %2238 }
0x14f0   :  { %v2241_v52 = vmul.f32 %v3293_v50, %v2239_v51 }
0x14f2   :  { %2243 = vrot.lane.b32.xlu1 %v2241_v52, %s3362_s27 }
0x155e   :  { %v2074_v55 = vpop.permute.xlu0 %2073 }
0x155f   :  { %v2076_v5 = vadd.f32 %v2074_v55, %v2066_v53 }
0x1561   :  { %3294 = vtanh.f32 %v2076_v5 }
0x1564   :  { %v2244_v61 = vpop.permute.xlu1 %2243 }
0x1565   :  { %v2246_v62 = vadd.f32 %v2244_v61, %v2236_v54 }
0x1567   :  { %3296 = vtanh.f32 %v2246_v62 }
0x156b   :  { %v3295_v2 = vpop.eup %3294 }
0x156c   :  { %2079 = vrot.lane.b32.xlu0 %v3295_v2, %s3361_s26 }
0x1571   :  { %v3297_v9 = vpop.eup %3296 }
0x1572   :  { %2249 = vrot.lane.b32.xlu1 %v3297_v9, %s3361_s26 }
0x15de   :  { %v2080_v3 = vpop.permute.xlu0 %2079 }
0x15df   :  { %v2082_v4 = vmul.f32 %v3291_v25, %v2080_v3 }
0x15e1   :  { %2084 = vrot.lane.b32.xlu0 %v2082_v4, %s3362_s27 }
0x15e4   :  { %v2250_v6 = vpop.permute.xlu1 %2249 }
0x15e5   :  { %v2252_v7 = vmul.f32 %v3293_v50, %v2250_v6 }
0x15e7   :  { %2254 = vrot.lane.b32.xlu1 %v2252_v7, %s3362_s27 }
0x1653   :  { %v2085_v8 = vpop.permute.xlu0 %2084 }
0x1654   :  { %2967 = vmatmul.mubr.msk.f32.vlgmr.msra.gmra.mrb[22].mxu1 %vm194_vm2, %v2085_v8 }
0x1655   :  { %3153 = vmatpush3.bf16.msra.mxu1 %v3450_v43  ;;  %2988 = vmatprep.mubr.msk.f32.mxu1 %vm3359_vm0, %v3360_v1 }
0x1656   :  { %3154 = vmatprep.subr.bf16.mxu1 %v3358_v0 }
0x1659   :  { %3156 = vmatpush3.bf16.msra.mxu1 %v3465_v49  ;;  %v2255_v10 = vpop.permute.xlu1 %2254 }
0x165a   :  { %3163 = vmatprep.subr.bf16.mxu1 %v3358_v0 }
0x165c   :  { %2989 = vmatmul.mubr.msk.f32.vlgmr.msra.gmra.mrb[24].mxu1 %vm194_vm2, %v2255_v10 }
0x165d   :  { %3010 = vmatprep.mubr.msk.f32.mxu1 %vm3359_vm0, %v3360_v1  ;;  %3165 = vmatpush3.bf16.msra.mxu1 %v3164_v33 }
0x165e   :  { %3166 = vmatprep.subr.bf16.mxu1 %v3358_v0 }
0x1661   :  { %3168 = vmatpush3.bf16.msra.mxu1 %v3167_v38 }
0x1727   :  { %v2154_v60 = vpop.f32.mrb[22].mxu1 }
0x1728   :  { %v2968_v56 = vpop.f32.mrb[23].mxu1 }
0x172f   :  { %v2324_v11 = vpop.f32.mrb[24].mxu1 }
0x1730   :  { %v2325_v12 = vadd.f32 %v2324_v11, %v2154_v60  ;;  %v2990_v43 = vpop.f32.mrb[25].mxu1 }
0x1732   :  { %v2328_v14 = vadd.f32 %v2325_v12, %v3511_v63  ;;  %v41_v63 = vld [vmem:[#allocation2 + $0x78] sm:$0xff] }
0x1733   :  { %v3158_v28 = vpack.c.bf16 %v41_v63, %v40_v26 }
0x1734   :  { %3298 = vtanh.f32 %v2328_v14  ;;  %v2571_v49 = vmul.f32 -1.442695, %v2328_v14 }
0x1735   :  { %3159 = vmatpush3.bf16.msra.mxu0 %v3158_v28 }
0x1736   :  { %3300 = vpow2.f32 %v2571_v49  ;;  %3160 = vmatprep.subr.bf16.mxu0 %v3358_v0  ;;  %v2435_v0 = vsub.s32 3, %v3429_v18 }
0x1738   :  { %v2436_v45 = vrot.slane %v3306_v40, %v2435_v0 }
0x1739   :  { %3162 = vmatpush3.bf16.msra.mxu0 %v3161_v29 }
0x173e   :  { %v3299_v15 = vpop.eup %3298 }
0x173f   :  { %2338 = vrot.lane.b32.xlu0 %v3299_v15, %s3361_s26 }
0x1740   :  { %v3301_v17 = vpop.eup %3300 }
0x1741   :  { %v2332_v20 = vadd.f32 1.0, %v3301_v17 }
0x1743   :  { %3302 = vrcp.f32 %v2332_v20 }
0x174d   :  { %v3303_v21 = vpop.eup %3302 }
0x174e   :  { %v2336_v1 = vmul.f32 %v3303_v21, %v2076_v5 }
0x17b1   :  { %v2339_v22 = vpop.permute.xlu0 %2338 }
0x17b2   :  { %v2341_v23 = vmul.f32 %v3303_v21, %v2339_v22 }
0x17b4   :  { %2343 = vrot.lane.b32.xlu1 %v2341_v23, %s3362_s27 }
0x1826   :  { %v2344_v19 = vpop.permute.xlu1 %2343 }
0x1827   :  { %v2346_v24 = vadd.f32 %v2344_v19, %v2336_v1 }
0x1829   :  { %3304 = vtanh.f32 %v2346_v24 }
0x1833   :  { %v3305_v30 = vpop.eup %3304 }
0x1834   :  { %2349 = vrot.lane.b32.xlu0 %v3305_v30, %s3361_s26 }
0x18a6   :  { %v2350_v34 = vpop.permute.xlu0 %2349 }
0x18a7   :  { %v2352_v35 = vmul.f32 %v3303_v21, %v2350_v34 }
0x18a9   :  { %2358 = vrot.lane.b32.xlu1 %v2352_v35, %s3362_s27 }
0x191b   :  { %v2359_v36 = vpop.permute.xlu1 %2358 }
0x191c   :  { %3000 = vmatmul.mubr.msk.f32.vlgmr.msra.gmra.mrb[30].mxu0 %vm194_vm2, %v2359_v36 }
0x19ef   :  { %v2428_v58 = vpop.f32.mrb[30].mxu0 }
0x19f0   :  { %v2429_v42 = vadd.f32 %v2428_v58, %v2356_v41  ;;  %v3001_v39 = vpop.f32.mrb[31].mxu0 }
0x19f2   :  { %v2432_v44 = vmax.f32 %v2429_v42, 0.0 }
0x19f4   :  { %3011 = vmatmul.mubr.msk.f32.vlgmr.msra.gmra.mrb[26].mxu1 %vm194_vm2, %v2432_v44 }
0x1ac7   :  { %v2506_v46 = vpop.f32.mrb[26].mxu1 }
0x1ac8   :  { %v2507_v47 = vadd.f32 %v2506_v46, %v2436_v45  ;;  %v3012_v25 = vpop.f32.mrb[27].mxu1 }
0x1aca   :  { %2510 = vst [vmem:[#allocation5] sm:$0xff] %v2507_v47 }
0x1acb   :  { %3340 = shalt.err (!%p3337_p12)
}
0x1acc   :  { %s3341_s16 = scalar_lea.hbm %s3797_s2, 128 }
0x1acd   :  { %p3342_p13 = scmp.ne.s32.totalorder %s3797_s2, %s3341_s16  ;;  %p3345_p0 = scmp.lt.u32.totalorder %s3341_s16, %s3797_s2 }
0x1acf   :  { %p3347_p1 = pnand %p3345_p0, %p3342_p13 }
0x1ad1   :  { %3350 = shalt.err (!%p3347_p1)
}
0x1ad2   :  { %2520 = dma.vmem_to_hbm [thread:$0]  %s2518_s12, 128, %s3797_s2, [#allocation4]  }
0x1ad3   :  { %3353 = dma.done.wait [#allocation4], 128  }
0x1ad4   :  { %3354 = vsyncadd [#allocation4], 4294967168 }
0x1ad5   :  { %2524 = vsyncpa [#allocation3], 1 }
0x1ad6   :  { %2525 = vsyncpa [#allocation4], 1 }

</bundles_post_ra>
